<compile_context>
chip_gen: v7x
topology: tpu7x:2x2x1
jax: 0.10.0
libtpu: 0.0.40
codegen_flags: <defaults>
</compile_context>

<pallas_src>
import numpy as np
import jax
import jax.numpy as jnp
from jax.experimental import pallas as pl
from jax.experimental.pallas import tpu as pltpu


# ---------------------- graph construction (host-side numpy, non-learnable) ---

def get_hop_distance(num_node, edge, max_hop=1):
    A = np.zeros((num_node, num_node))
    for i, j in edge:
        A[j, i] = 1
        A[i, j] = 1
    hop_dis = np.zeros((num_node, num_node)) + np.inf
    transfer_mat = [np.linalg.matrix_power(A, d) for d in range(0, max_hop + 1)]
    arrive_mat = np.stack(transfer_mat) > 0
    for d in range(max_hop, -1, -1):
        hop_dis[arrive_mat[d]] = d
    return hop_dis


def normalize_undigraph(A):
    Dl = np.sum(A, 0)
    num_node = A.shape[0]
    I = np.eye(num_node)
    Dn = np.zeros((num_node, num_node))
    for i in range(num_node):
        if Dl[i] > 0:
            Dn[i, i] = Dl[i] ** (-0.5)
    DAD = np.dot(np.dot(Dn, A), Dn)
    return I - DAD


def build_graph_A(layout):
    if layout == 'face1':
        num_node = 10
        edge = [(1, 2), (0, 1), (4, 3), (5, 4), (8, 6), (8, 7), (6, 9), (7, 9),
                (0, 3), (3, 8), (0, 8)]
    elif layout == 'face2':
        num_node = 3
        edge = [(1, 0), (1, 2), (0, 2)]
    elif layout == 'face3':
        num_node = 1
        edge = []
    else:
        raise ValueError('Do Not Exist This Layout.')
    hop_dis = get_hop_distance(num_node, edge, max_hop=1)
    adjacency = np.zeros((num_node, num_node))
    adjacency[hop_dis == 1] = 1
    norm_adj = normalize_undigraph(adjacency)
    A = np.zeros((1, num_node, num_node))      # 'uniform' strategy, K == 1
    A[0] = norm_adj
    return A.astype(np.float32)


def _round_up(x, m):
    return ((x + m - 1) // m) * m


# -------------------------------- fused Pallas kernel --------------------------

def stgcn_fused(xs, w1, b1, s1, w2, b2, s2, w3, b3, w4, b4, wf, bf,
                *, T_in, kts, A1, A2, pool1, pool2, samples_per_step):
    """Whole forward pass (4 st_gcn blocks + fcn) in ONE pallas_call.

    xs : (N, V1*S1, kt1*C_in) node-stacked, channel-last, block-1-im2col input
         (per node, rows t >= T_in are zero).
    Returns lane-dense (N, T4, num_class) logits and (N, T4, 64) features;
    the wrapper restores the PyTorch (C, T) flatten order.
    """
    f32 = jnp.float32
    N, R1, K1 = xs.shape
    Nb = samples_per_step
    assert N % Nb == 0
    G = N // Nb
    V1, V2 = A1.shape[0], A2.shape[0]
    S1 = R1 // V1
    H = w1.shape[1]
    nc = wf.shape[1]
    kt1, kt2, kt3, kt4 = kts

    T1 = T_in - (kt1 - 1)
    T2 = T1 - (kt2 - 1)
    T3 = T2 - (kt3 - 1)
    T4 = T3 - (kt4 - 1)
    assert T4 >= 1, "input T too short for the four temporal convs"
    # Garbage-row invariant: for every valid output row t the taps read rows
    # [t, t + kt - 1], which must stay inside the same S1-row node block, i.e.
    # the per-block valid input length never exceeds S1.  (Roll wrap rows and
    # zero-padded rows therefore only ever feed invalid output rows.)
    for tin_b in (T_in, T1, T2, T3):
        assert tin_b <= S1
    assert len(pool1) == V2 and len(pool2) == 1

    R2 = V2 * S1                     # per-sample rows entering block 2
    RB1, RB2, RB3 = Nb * R1, Nb * R2, Nb * S1

    def shift_rows(a, tau):
        # a[i] -> a[(i + tau) % rows]: sublane rotate on the (otherwise idle) XLU.
        rows = a.shape[0]
        tau = tau % rows
        if tau == 0:
            return a
        return pltpu.roll(a, rows - tau, axis=0)

    def tconv_pairs(x, wp_ref, b_ref):
        # Temporal conv (kernel (kt,1), stride 1, valid) with taps packed in
        # pairs along the contraction dim (K = 128 per MXU matmul):
        # y[i] = [x[i] | x[i+1]]; pair p uses y shifted by 2p.  Odd kernels
        # get a zero-padded dummy tap (host side) -> contributes exactly 0.
        y = jnp.concatenate([x, shift_rows(x, 1)], axis=-1)        # (rows, 2C)
        acc = jnp.dot(y, wp_ref[0], preferred_element_type=f32)
        for p in range(1, wp_ref.shape[0]):
            acc = acc + jnp.dot(shift_rows(y, 2 * p), wp_ref[p],
                                preferred_element_type=f32)
        return acc + b_ref[...]

    def gcn_bn_pool(h, A_np, pool, shift_row, node_rows, n_nodes):
        # graph einsum 'nkctv,kvw->nctw' (K==1) with the fixed adjacency baked
        # in as compile-time constants, fused with the node-group max pool;
        # the BN shift (scale already folded into W/b) is added after the max
        # (identical result), then ReLU.  Returns (sample, group)-ordered
        # blocks of (S1, C).
        outs = []
        for nb in range(Nb):
            base = nb * node_rows
            for (p0, p1) in pool:
                m = None
                for w in range(p0, p1):
                    z = None
                    for v in range(n_nodes):
                        a = float(A_np[v, w])
                        if a != 0.0:
                            t = h[base + v * S1: base + (v + 1) * S1, :] * a
                            z = t if z is None else z + t
                    if z is None:
                        z = jnp.zeros((S1, h.shape[1]), f32)
                    m = z if m is None else jnp.maximum(m, z)
                outs.append(jnp.maximum(m + shift_row, 0.0))
        return outs

    def kernel(x_ref, w1_ref, b1_ref, s1_ref, w2_ref, b2_ref, s2_ref,
               w3_ref, b3_ref, w4_ref, b4_ref, wf_ref, bf_ref,
               logits_ref, feat_ref):
        # ---- block 1: host-side im2col -> ONE (RB1, K1) x (K1, H) matmul ----
        x0 = x_ref[...].reshape(RB1, K1)
        h1 = jnp.dot(x0, w1_ref[...], preferred_element_type=f32) + b1_ref[...]
        sh1 = jnp.broadcast_to(s1_ref[...], (S1, H))         # hoisted broadcast
        g1 = gcn_bn_pool(h1, A1, pool1, sh1, R1, V1)         # Nb*V2 x (S1, H)
        x2 = jnp.concatenate(g1, axis=0)                     # (RB2, H)

        # ---- block 2 --------------------------------------------------------
        h2 = tconv_pairs(x2, w2_ref, b2_ref)                 # (RB2, H)
        sh2 = jnp.broadcast_to(s2_ref[...], (S1, H))
        g2 = gcn_bn_pool(h2, A2, pool2, sh2, R2, V2)         # Nb x (S1, H)
        x3 = g2[0] if len(g2) == 1 else jnp.concatenate(g2, axis=0)   # (RB3, H)

        # ---- blocks 3 & 4: plain temporal conv + (folded) BN + ReLU ---------
        h3 = jnp.maximum(tconv_pairs(x3, w3_ref, b3_ref), 0.0)
        h4 = jnp.maximum(tconv_pairs(h3, w4_ref, b4_ref), 0.0)

        # ---- fcn (1x1 conv) + lane-dense (T4, *) outputs per sample ----------
        logit = jnp.dot(h4, wf_ref[...], preferred_element_type=f32) + bf_ref[...]
        for nb in range(Nb):
            feat_ref[nb] = h4[nb * S1: nb * S1 + T4, :]
            logits_ref[nb] = logit[nb * S1: nb * S1 + T4, :]

    def full(shape):
        nd = len(shape)
        return pl.BlockSpec(shape, lambda g, _nd=nd: (0,) * _nd)

    return pl.pallas_call(
        kernel,
        out_shape=(jax.ShapeDtypeStruct((N, T4, nc), f32),
                   jax.ShapeDtypeStruct((N, T4, H), f32)),
        grid_spec=pltpu.PrefetchScalarGridSpec(
            num_scalar_prefetch=0,
            grid=(G,),
            in_specs=[
                pl.BlockSpec((Nb, R1, K1), lambda g: (g, 0, 0)),
                full(w1.shape), full(b1.shape), full(s1.shape),
                full(w2.shape), full(b2.shape), full(s2.shape),
                full(w3.shape), full(b3.shape),
                full(w4.shape), full(b4.shape),
                full(wf.shape), full(bf.shape),
            ],
            out_specs=[
                pl.BlockSpec((Nb, T4, nc), lambda g: (g, 0, 0)),
                pl.BlockSpec((Nb, T4, H), lambda g: (g, 0, 0)),
            ],
        ),
        compiler_params=pltpu.CompilerParams(
            dimension_semantics=("parallel",),
            vmem_limit_bytes=32 * 1024 * 1024),
    )(xs, w1, b1, s1, w2, b2, s2, w3, b3, w4, b4, wf, bf)


def _forward_impl(params, x_nctv, A1, A2, pool1, pool2, kts):
    # PyTorch input layout is (N, C, T, V); the kernel uses a node-stacked,
    # channel-last layout with block-1 im2col: (N, V*S1, kt1*C), per-node time
    # zero-padded to a multiple of 8.  This relayout is one fused XLA op.
    N, Cin, T, V = x_nctv.shape
    kt1 = kts[0]
    S1 = _round_up(T, 8)

    # Samples per grid step: batch samples to amortize the ~0.35us/step fixed
    # overhead, but keep >= 2 grid steps so both v7x TensorCores get work.
    Nb = 1
    for cand in (4, 3, 2):
        if N % cand == 0 and N // cand >= 2:
            Nb = cand
            break

    xt = jnp.transpose(x_nctv, (0, 3, 2, 1))                         # (N, V, T, C)
    xt = jnp.pad(xt, ((0, 0), (0, 0), (0, S1 + kt1 - 1 - T), (0, 0)))
    xi = jnp.concatenate([xt[:, :, tau:tau + S1, :] for tau in range(kt1)],
                         axis=-1)                                    # (N, V, S1, kt1*C)
    xs = xi.reshape(N, V * S1, kt1 * Cin)

    logits_tn, feat_tc = stgcn_fused(
        xs,
        params['w1'], params['b1'], params['s1'],
        params['w2'], params['b2'], params['s2'],
        params['w3'], params['b3'],
        params['w4'], params['b4'],
        params['wf'], params['bf'],
        T_in=T, kts=kts, A1=A1, A2=A2, pool1=pool1, pool2=pool2,
        samples_per_step=Nb)

    # Kernel outputs are lane-dense (N, T4, *); restore the PyTorch (C, T)
    # flatten order with tiny XLA transposes outside the kernel.
    logits = jnp.transpose(logits_tn, (0, 2, 1)).reshape(N, -1, 1)
    feat = jnp.transpose(feat_tc, (0, 2, 1)).reshape(N, 1, -1)
    return logits, feat


# ----------------------------- pure-JAX reference ------------------------------

def _reference_forward(raw, x, A1, A2, pool1, pool2):
    """Pure-JAX mirror of the PyTorch forward (eval-mode BatchNorm)."""
    hp = jax.lax.Precision.HIGHEST
    eps = 1e-5
    bn_scale = 1.0 / np.sqrt(1.0 + eps)     # gamma=1, var=1
    bn_shift = 0.0                          # beta=0, mean=0

    def tconv(h, w, b):
        kt = w.shape[0]
        T = h.shape[2]
        out = None
        for tau in range(kt):
            c = jnp.einsum('nctv,cd->ndtv', h[:, :, tau:T - kt + 1 + tau, :],
                           w[tau], precision=hp)
            out = c if out is None else out + c
        return out + b.reshape(1, -1, 1, 1)

    def gconv(h, A):
        return jnp.einsum('nctv,vw->nctw', h, jnp.asarray(A), precision=hp)

    def maxpool(h, pool):
        return jnp.concatenate(
            [jnp.max(h[:, :, :, p0:p1], axis=-1, keepdims=True)
             for (p0, p1) in pool], axis=-1)

    h = tconv(x, raw['w1'], raw['b1'])
    h = gconv(h, A1) * bn_scale + bn_shift
    h = jax.nn.relu(maxpool(h, pool1))

    h = tconv(h, raw['w2'], raw['b2'])
    h = gconv(h, A2) * bn_scale + bn_shift
    h = jax.nn.relu(maxpool(h, pool2))

    h = jax.nn.relu(tconv(h, raw['w3'], raw['b3']) * bn_scale + bn_shift)
    h = jax.nn.relu(tconv(h, raw['w4'], raw['b4']) * bn_scale + bn_shift)

    feat = h                                                        # (N, 64, T4, 1)
    logits = (jnp.einsum('nctv,oc->notv', h, raw['wf'], precision=hp)
              + raw['bf'].reshape(1, -1, 1, 1))
    N = x.shape[0]
    return logits.reshape(N, -1, 1), feat.reshape(N, 1, -1)


# --------------------------------- model wrapper --------------------------------

class PallasModel:
    HIDDEN = 64

    def __init__(self, in_channels, num_class, key):
        A1 = build_graph_A('face1')[0]          # (10, 10)
        A2 = build_graph_A('face2')[0]          # (3, 3)
        _A3 = build_graph_A('face3')            # parity; unused (ifgcn=False blocks)
        pool1 = ((0, 3), (3, 6), (6, 10))
        pool2 = ((0, 3),)
        kts = (3, 5, 5, 7)
        H = self.HIDDEN
        eps = 1e-5

        # Fresh-init eval-mode BatchNorm: gamma=1, beta=0, mean=0, var=1.
        bn_scale = 1.0 / np.sqrt(1.0 + eps)
        bn_shift = 0.0
        # Folding bn_scale through the graph conv / node max-pool requires a
        # non-negative per-channel scale (holds for fresh init).
        assert bn_scale >= 0.0

        def conv_init(key, kt, cin, cout):
            key, kw, kb = jax.random.split(key, 3)
            fan_in = cin * kt
            w = jax.random.normal(kw, (kt, cin, cout), jnp.float32) * np.sqrt(2.0 / fan_in)
            b = jax.random.uniform(kb, (cout,), jnp.float32, -1.0, 1.0) / np.sqrt(fan_in)
            return key, w, b

        raw = {}
        key, raw['w1'], raw['b1'] = conv_init(key, kts[0], in_channels, H)
        key, raw['w2'], raw['b2'] = conv_init(key, kts[1], H, H)
        key, raw['w3'], raw['b3'] = conv_init(key, kts[2], H, H)
        key, raw['w4'], raw['b4'] = conv_init(key, kts[3], H, H)
        key, kfw, kfb = jax.random.split(key, 3)
        raw['wf'] = jax.random.normal(kfw, (num_class, H), jnp.float32) * np.sqrt(2.0 / H)
        raw['bf'] = jax.random.uniform(kfb, (num_class,), jnp.float32, -1.0, 1.0) / np.sqrt(H)

        def pack_pairs(w):
            # (kt, cin, cout) -> (ceil(kt/2), 2*cin, cout): temporal taps packed
            # in pairs along the MXU contraction dim (K=128); odd kt gets a
            # zero tap (contributes exactly 0 in the kernel).
            kt, cin, cout = w.shape
            if kt % 2 == 1:
                w = jnp.concatenate([w, jnp.zeros((1, cin, cout), w.dtype)], axis=0)
            return w.reshape(w.shape[0] // 2, 2 * cin, cout)

        p = {}
        # block 1 (ifgcn=True, kt=3): BN scale folded into the im2col'd W/b;
        # the BN shift is applied after the node max-pool inside the kernel.
        p['w1'] = (raw['w1'] * bn_scale).reshape(kts[0] * in_channels, H)
        p['b1'] = (raw['b1'] * bn_scale).reshape(1, H)
        p['s1'] = jnp.full((1, H), bn_shift, jnp.float32)
        # block 2 (ifgcn=True, kt=5)
        p['w2'] = pack_pairs(raw['w2'] * bn_scale)
        p['b2'] = (raw['b2'] * bn_scale).reshape(1, H)
        p['s2'] = jnp.full((1, H), bn_shift, jnp.float32)
        # blocks 3/4 (ifgcn=False): no graph conv -> fold shift into the bias.
        p['w3'] = pack_pairs(raw['w3'] * bn_scale)
        p['b3'] = (raw['b3'] * bn_scale + bn_shift).reshape(1, H)
        p['w4'] = pack_pairs(raw['w4'] * bn_scale)
        p['b4'] = (raw['b4'] * bn_scale + bn_shift).reshape(1, H)
        # fcn 1x1 conv, stored transposed so the kernel emits lane-dense (T, nc).
        p['wf'] = jnp.transpose(raw['wf'], (1, 0))        # (H, num_class)
        p['bf'] = raw['bf'].reshape(1, num_class)

        self.raw = raw
        self.params = p
        self.A1, self.A2 = A1, A2
        self.pool1, self.pool2, self.kts = pool1, pool2, kts
        self._fwd = jax.jit(lambda params, xx: _forward_impl(
            params, xx, A1, A2, pool1, pool2, kts))

    def __call__(self, x_nctv):
        return self._fwd(self.params, x_nctv)

    def reference(self, x_nctv):
        return _reference_forward(self.raw, x_nctv, self.A1, self.A2,
                                  self.pool1, self.pool2)


if __name__ == "__main__":
    key = jax.random.PRNGKey(0)
    key, kx, kp = jax.random.split(key, 3)

    N, C_IN, T_IN, V_IN = 2, 3, 24, 10      # T must be >= 17 (temporal convs eat 16)
    NUM_CLASS = 5

    x = jax.random.normal(kx, (N, C_IN, T_IN, V_IN), jnp.float32)

    model = PallasModel(C_IN, NUM_CLASS, kp)
    logits, contrast = model(x)
    jax.block_until_ready((logits, contrast))

    T_FINAL = T_IN - 16                      # 24 -> 22 -> 18 -> 14 -> 8
    assert logits.shape == (N, NUM_CLASS * T_FINAL, 1), logits.shape
    assert contrast.shape == (N, 1, PallasModel.HIDDEN * T_FINAL), contrast.shape
    assert bool(jnp.all(jnp.isfinite(logits))) and bool(jnp.all(jnp.isfinite(contrast)))

    # Pure-JAX reference check (loose tolerance to cover MXU precision modes).
    ref_logits, ref_contrast = model.reference(x)
    np.testing.assert_allclose(np.asarray(logits), np.asarray(ref_logits),
                               rtol=5e-2, atol=5e-2)
    np.testing.assert_allclose(np.asarray(contrast), np.asarray(ref_contrast),
                               rtol=5e-2, atol=5e-2)

    print("KERNEL_OK")
</pallas_src>

<mosaic_0001>
module attributes {stable_mosaic.version = 11 : i64} {
  func.func @kernel(%arg0: i32, %arg1: memref<1x240x9xf32, #tpu.memory_space<vmem>>, %arg2: memref<9x64xf32, #tpu.memory_space<vmem>>, %arg3: memref<1x64xf32, #tpu.memory_space<vmem>>, %arg4: memref<1x64xf32, #tpu.memory_space<vmem>>, %arg5: memref<3x128x64xf32, #tpu.memory_space<vmem>>, %arg6: memref<1x64xf32, #tpu.memory_space<vmem>>, %arg7: memref<1x64xf32, #tpu.memory_space<vmem>>, %arg8: memref<3x128x64xf32, #tpu.memory_space<vmem>>, %arg9: memref<1x64xf32, #tpu.memory_space<vmem>>, %arg10: memref<4x128x64xf32, #tpu.memory_space<vmem>>, %arg11: memref<1x64xf32, #tpu.memory_space<vmem>>, %arg12: memref<64x5xf32, #tpu.memory_space<vmem>>, %arg13: memref<1x5xf32, #tpu.memory_space<vmem>>, %arg14: memref<1x8x5xf32, #tpu.memory_space<vmem>>, %arg15: memref<1x8x64xf32, #tpu.memory_space<vmem>>) attributes {dimension_semantics = [#tpu.dimension_semantics<parallel>], iteration_bounds = array<i64: 2>, scalar_prefetch = 0 : i64, scratch_operands = 0 : i64, tpu.core_type = #tpu.core_type<tc>, window_params = [{transform_indices = @transform_0, window_bounds = array<i64: 1, 240, 9>}, {pipeline_mode = #tpu.pipeline_mode<synchronous>, transform_indices = @transform_1, window_bounds = array<i64: 9, 64>}, {pipeline_mode = #tpu.pipeline_mode<synchronous>, transform_indices = @transform_2, window_bounds = array<i64: 1, 64>}, {pipeline_mode = #tpu.pipeline_mode<synchronous>, transform_indices = @transform_3, window_bounds = array<i64: 1, 64>}, {pipeline_mode = #tpu.pipeline_mode<synchronous>, transform_indices = @transform_4, window_bounds = array<i64: 3, 128, 64>}, {pipeline_mode = #tpu.pipeline_mode<synchronous>, transform_indices = @transform_5, window_bounds = array<i64: 1, 64>}, {pipeline_mode = #tpu.pipeline_mode<synchronous>, transform_indices = @transform_6, window_bounds = array<i64: 1, 64>}, {pipeline_mode = #tpu.pipeline_mode<synchronous>, transform_indices = @transform_7, window_bounds = array<i64: 3, 128, 64>}, {pipeline_mode = #tpu.pipeline_mode<synchronous>, transform_indices = @transform_8, window_bounds = array<i64: 1, 64>}, {pipeline_mode = #tpu.pipeline_mode<synchronous>, transform_indices = @transform_9, window_bounds = array<i64: 4, 128, 64>}, {pipeline_mode = #tpu.pipeline_mode<synchronous>, transform_indices = @transform_10, window_bounds = array<i64: 1, 64>}, {pipeline_mode = #tpu.pipeline_mode<synchronous>, transform_indices = @transform_11, window_bounds = array<i64: 64, 5>}, {pipeline_mode = #tpu.pipeline_mode<synchronous>, transform_indices = @transform_12, window_bounds = array<i64: 1, 5>}, {transform_indices = @transform_13, window_bounds = array<i64: 1, 8, 5>}, {transform_indices = @transform_14, window_bounds = array<i64: 1, 8, 64>}]} {
    %c0 = arith.constant 0 : index
    %c0_0 = arith.constant 0 : index
    %c0_1 = arith.constant 0 : index
    %0 = vector.load %arg1[%c0, %c0_0, %c0_1] : memref<1x240x9xf32, #tpu.memory_space<vmem>>, vector<1x240x9xf32>
    %1 = vector.shape_cast %0 : vector<1x240x9xf32> to vector<240x9xf32>
    %c0_2 = arith.constant 0 : index
    %c0_3 = arith.constant 0 : index
    %2 = vector.load %arg2[%c0_2, %c0_3] : memref<9x64xf32, #tpu.memory_space<vmem>>, vector<9x64xf32>
    %cst = arith.constant dense<0.000000e+00> : vector<240x64xf32>
    %3 = tpu.matmul %1, %2, %cst {dimension_numbers = #tpu.dot_dimension_numbers<[1], [0], [0], [1], [0, 0, 1, 1], [], []>} : vector<240x9xf32>, vector<9x64xf32>, vector<240x64xf32> -> vector<240x64xf32>
    %c0_4 = arith.constant 0 : index
    %c0_5 = arith.constant 0 : index
    %4 = vector.load %arg3[%c0_4, %c0_5] : memref<1x64xf32, #tpu.memory_space<vmem>>, vector<1x64xf32>
    %5 = vector.broadcast %4 : vector<1x64xf32> to vector<240x64xf32>
    %6 = arith.addf %3, %5 : vector<240x64xf32>
    %c0_6 = arith.constant 0 : index
    %c0_7 = arith.constant 0 : index
    %7 = vector.load %arg4[%c0_6, %c0_7] : memref<1x64xf32, #tpu.memory_space<vmem>>, vector<1x64xf32>
    %8 = vector.shape_cast %7 : vector<1x64xf32> to vector<1x64xf32>
    %9 = vector.broadcast %8 : vector<1x64xf32> to vector<24x64xf32>
    %10 = vector.extract_strided_slice %6 {offsets = [0, 0], sizes = [24, 64], strides = [1, 1]} : vector<240x64xf32> to vector<24x64xf32>
    %cst_8 = arith.constant 1.000000e+00 : f32
    %11 = vector.broadcast %cst_8 : f32 to vector<24x64xf32>
    %12 = arith.mulf %10, %11 : vector<24x64xf32>
    %13 = vector.extract_strided_slice %6 {offsets = [24, 0], sizes = [24, 64], strides = [1, 1]} : vector<240x64xf32> to vector<24x64xf32>
    %cst_9 = arith.constant -0.408248305 : f32
    %14 = vector.broadcast %cst_9 : f32 to vector<24x64xf32>
    %15 = arith.mulf %13, %14 : vector<24x64xf32>
    %16 = arith.addf %12, %15 : vector<24x64xf32>
    %17 = vector.extract_strided_slice %6 {offsets = [72, 0], sizes = [24, 64], strides = [1, 1]} : vector<240x64xf32> to vector<24x64xf32>
    %cst_10 = arith.constant -0.333333343 : f32
    %18 = vector.broadcast %cst_10 : f32 to vector<24x64xf32>
    %19 = arith.mulf %17, %18 : vector<24x64xf32>
    %20 = arith.addf %16, %19 : vector<24x64xf32>
    %21 = vector.extract_strided_slice %6 {offsets = [192, 0], sizes = [24, 64], strides = [1, 1]} : vector<240x64xf32> to vector<24x64xf32>
    %cst_11 = arith.constant -0.288675129 : f32
    %22 = vector.broadcast %cst_11 : f32 to vector<24x64xf32>
    %23 = arith.mulf %21, %22 : vector<24x64xf32>
    %24 = arith.addf %20, %23 : vector<24x64xf32>
    %25 = vector.extract_strided_slice %6 {offsets = [0, 0], sizes = [24, 64], strides = [1, 1]} : vector<240x64xf32> to vector<24x64xf32>
    %cst_12 = arith.constant -0.408248305 : f32
    %26 = vector.broadcast %cst_12 : f32 to vector<24x64xf32>
    %27 = arith.mulf %25, %26 : vector<24x64xf32>
    %28 = vector.extract_strided_slice %6 {offsets = [24, 0], sizes = [24, 64], strides = [1, 1]} : vector<240x64xf32> to vector<24x64xf32>
    %cst_13 = arith.constant 1.000000e+00 : f32
    %29 = vector.broadcast %cst_13 : f32 to vector<24x64xf32>
    %30 = arith.mulf %28, %29 : vector<24x64xf32>
    %31 = arith.addf %27, %30 : vector<24x64xf32>
    %32 = vector.extract_strided_slice %6 {offsets = [48, 0], sizes = [24, 64], strides = [1, 1]} : vector<240x64xf32> to vector<24x64xf32>
    %cst_14 = arith.constant -0.707106769 : f32
    %33 = vector.broadcast %cst_14 : f32 to vector<24x64xf32>
    %34 = arith.mulf %32, %33 : vector<24x64xf32>
    %35 = arith.addf %31, %34 : vector<24x64xf32>
    %36 = arith.maximumf %24, %35 : vector<24x64xf32>
    %37 = vector.extract_strided_slice %6 {offsets = [24, 0], sizes = [24, 64], strides = [1, 1]} : vector<240x64xf32> to vector<24x64xf32>
    %cst_15 = arith.constant -0.707106769 : f32
    %38 = vector.broadcast %cst_15 : f32 to vector<24x64xf32>
    %39 = arith.mulf %37, %38 : vector<24x64xf32>
    %40 = vector.extract_strided_slice %6 {offsets = [48, 0], sizes = [24, 64], strides = [1, 1]} : vector<240x64xf32> to vector<24x64xf32>
    %cst_16 = arith.constant 1.000000e+00 : f32
    %41 = vector.broadcast %cst_16 : f32 to vector<24x64xf32>
    %42 = arith.mulf %40, %41 : vector<24x64xf32>
    %43 = arith.addf %39, %42 : vector<24x64xf32>
    %44 = arith.maximumf %36, %43 : vector<24x64xf32>
    %45 = arith.addf %44, %9 : vector<24x64xf32>
    %cst_17 = arith.constant 0.000000e+00 : f32
    %46 = vector.broadcast %cst_17 : f32 to vector<24x64xf32>
    %47 = arith.maximumf %45, %46 : vector<24x64xf32>
    %48 = vector.extract_strided_slice %6 {offsets = [0, 0], sizes = [24, 64], strides = [1, 1]} : vector<240x64xf32> to vector<24x64xf32>
    %cst_18 = arith.constant -0.333333343 : f32
    %49 = vector.broadcast %cst_18 : f32 to vector<24x64xf32>
    %50 = arith.mulf %48, %49 : vector<24x64xf32>
    %51 = vector.extract_strided_slice %6 {offsets = [72, 0], sizes = [24, 64], strides = [1, 1]} : vector<240x64xf32> to vector<24x64xf32>
    %cst_19 = arith.constant 1.000000e+00 : f32
    %52 = vector.broadcast %cst_19 : f32 to vector<24x64xf32>
    %53 = arith.mulf %51, %52 : vector<24x64xf32>
    %54 = arith.addf %50, %53 : vector<24x64xf32>
    %55 = vector.extract_strided_slice %6 {offsets = [96, 0], sizes = [24, 64], strides = [1, 1]} : vector<240x64xf32> to vector<24x64xf32>
    %cst_20 = arith.constant -0.408248305 : f32
    %56 = vector.broadcast %cst_20 : f32 to vector<24x64xf32>
    %57 = arith.mulf %55, %56 : vector<24x64xf32>
    %58 = arith.addf %54, %57 : vector<24x64xf32>
    %59 = vector.extract_strided_slice %6 {offsets = [192, 0], sizes = [24, 64], strides = [1, 1]} : vector<240x64xf32> to vector<24x64xf32>
    %cst_21 = arith.constant -0.288675129 : f32
    %60 = vector.broadcast %cst_21 : f32 to vector<24x64xf32>
    %61 = arith.mulf %59, %60 : vector<24x64xf32>
    %62 = arith.addf %58, %61 : vector<24x64xf32>
    %63 = vector.extract_strided_slice %6 {offsets = [72, 0], sizes = [24, 64], strides = [1, 1]} : vector<240x64xf32> to vector<24x64xf32>
    %cst_22 = arith.constant -0.408248305 : f32
    %64 = vector.broadcast %cst_22 : f32 to vector<24x64xf32>
    %65 = arith.mulf %63, %64 : vector<24x64xf32>
    %66 = vector.extract_strided_slice %6 {offsets = [96, 0], sizes = [24, 64], strides = [1, 1]} : vector<240x64xf32> to vector<24x64xf32>
    %cst_23 = arith.constant 1.000000e+00 : f32
    %67 = vector.broadcast %cst_23 : f32 to vector<24x64xf32>
    %68 = arith.mulf %66, %67 : vector<24x64xf32>
    %69 = arith.addf %65, %68 : vector<24x64xf32>
    %70 = vector.extract_strided_slice %6 {offsets = [120, 0], sizes = [24, 64], strides = [1, 1]} : vector<240x64xf32> to vector<24x64xf32>
    %cst_24 = arith.constant -0.707106769 : f32
    %71 = vector.broadcast %cst_24 : f32 to vector<24x64xf32>
    %72 = arith.mulf %70, %71 : vector<24x64xf32>
    %73 = arith.addf %69, %72 : vector<24x64xf32>
    %74 = arith.maximumf %62, %73 : vector<24x64xf32>
    %75 = vector.extract_strided_slice %6 {offsets = [96, 0], sizes = [24, 64], strides = [1, 1]} : vector<240x64xf32> to vector<24x64xf32>
    %cst_25 = arith.constant -0.707106769 : f32
    %76 = vector.broadcast %cst_25 : f32 to vector<24x64xf32>
    %77 = arith.mulf %75, %76 : vector<24x64xf32>
    %78 = vector.extract_strided_slice %6 {offsets = [120, 0], sizes = [24, 64], strides = [1, 1]} : vector<240x64xf32> to vector<24x64xf32>
    %cst_26 = arith.constant 1.000000e+00 : f32
    %79 = vector.broadcast %cst_26 : f32 to vector<24x64xf32>
    %80 = arith.mulf %78, %79 : vector<24x64xf32>
    %81 = arith.addf %77, %80 : vector<24x64xf32>
    %82 = arith.maximumf %74, %81 : vector<24x64xf32>
    %83 = arith.addf %82, %9 : vector<24x64xf32>
    %cst_27 = arith.constant 0.000000e+00 : f32
    %84 = vector.broadcast %cst_27 : f32 to vector<24x64xf32>
    %85 = arith.maximumf %83, %84 : vector<24x64xf32>
    %86 = vector.extract_strided_slice %6 {offsets = [144, 0], sizes = [24, 64], strides = [1, 1]} : vector<240x64xf32> to vector<24x64xf32>
    %cst_28 = arith.constant 1.000000e+00 : f32
    %87 = vector.broadcast %cst_28 : f32 to vector<24x64xf32>
    %88 = arith.mulf %86, %87 : vector<24x64xf32>
    %89 = vector.extract_strided_slice %6 {offsets = [192, 0], sizes = [24, 64], strides = [1, 1]} : vector<240x64xf32> to vector<24x64xf32>
    %cst_29 = arith.constant -0.353553385 : f32
    %90 = vector.broadcast %cst_29 : f32 to vector<24x64xf32>
    %91 = arith.mulf %89, %90 : vector<24x64xf32>
    %92 = arith.addf %88, %91 : vector<24x64xf32>
    %93 = vector.extract_strided_slice %6 {offsets = [216, 0], sizes = [24, 64], strides = [1, 1]} : vector<240x64xf32> to vector<24x64xf32>
    %cst_30 = arith.constant -5.000000e-01 : f32
    %94 = vector.broadcast %cst_30 : f32 to vector<24x64xf32>
    %95 = arith.mulf %93, %94 : vector<24x64xf32>
    %96 = arith.addf %92, %95 : vector<24x64xf32>
    %97 = vector.extract_strided_slice %6 {offsets = [168, 0], sizes = [24, 64], strides = [1, 1]} : vector<240x64xf32> to vector<24x64xf32>
    %cst_31 = arith.constant 1.000000e+00 : f32
    %98 = vector.broadcast %cst_31 : f32 to vector<24x64xf32>
    %99 = arith.mulf %97, %98 : vector<24x64xf32>
    %100 = vector.extract_strided_slice %6 {offsets = [192, 0], sizes = [24, 64], strides = [1, 1]} : vector<240x64xf32> to vector<24x64xf32>
    %cst_32 = arith.constant -0.353553385 : f32
    %101 = vector.broadcast %cst_32 : f32 to vector<24x64xf32>
    %102 = arith.mulf %100, %101 : vector<24x64xf32>
    %103 = arith.addf %99, %102 : vector<24x64xf32>
    %104 = vector.extract_strided_slice %6 {offsets = [216, 0], sizes = [24, 64], strides = [1, 1]} : vector<240x64xf32> to vector<24x64xf32>
    %cst_33 = arith.constant -5.000000e-01 : f32
    %105 = vector.broadcast %cst_33 : f32 to vector<24x64xf32>
    %106 = arith.mulf %104, %105 : vector<24x64xf32>
    %107 = arith.addf %103, %106 : vector<24x64xf32>
    %108 = arith.maximumf %96, %107 : vector<24x64xf32>
    %109 = vector.extract_strided_slice %6 {offsets = [0, 0], sizes = [24, 64], strides = [1, 1]} : vector<240x64xf32> to vector<24x64xf32>
    %cst_34 = arith.constant -0.288675129 : f32
    %110 = vector.broadcast %cst_34 : f32 to vector<24x64xf32>
    %111 = arith.mulf %109, %110 : vector<24x64xf32>
    %112 = vector.extract_strided_slice %6 {offsets = [72, 0], sizes = [24, 64], strides = [1, 1]} : vector<240x64xf32> to vector<24x64xf32>
    %cst_35 = arith.constant -0.288675129 : f32
    %113 = vector.broadcast %cst_35 : f32 to vector<24x64xf32>
    %114 = arith.mulf %112, %113 : vector<24x64xf32>
    %115 = arith.addf %111, %114 : vector<24x64xf32>
    %116 = vector.extract_strided_slice %6 {offsets = [144, 0], sizes = [24, 64], strides = [1, 1]} : vector<240x64xf32> to vector<24x64xf32>
    %cst_36 = arith.constant -0.353553385 : f32
    %117 = vector.broadcast %cst_36 : f32 to vector<24x64xf32>
    %118 = arith.mulf %116, %117 : vector<24x64xf32>
    %119 = arith.addf %115, %118 : vector<24x64xf32>
    %120 = vector.extract_strided_slice %6 {offsets = [168, 0], sizes = [24, 64], strides = [1, 1]} : vector<240x64xf32> to vector<24x64xf32>
    %cst_37 = arith.constant -0.353553385 : f32
    %121 = vector.broadcast %cst_37 : f32 to vector<24x64xf32>
    %122 = arith.mulf %120, %121 : vector<24x64xf32>
    %123 = arith.addf %119, %122 : vector<24x64xf32>
    %124 = vector.extract_strided_slice %6 {offsets = [192, 0], sizes = [24, 64], strides = [1, 1]} : vector<240x64xf32> to vector<24x64xf32>
    %cst_38 = arith.constant 1.000000e+00 : f32
    %125 = vector.broadcast %cst_38 : f32 to vector<24x64xf32>
    %126 = arith.mulf %124, %125 : vector<24x64xf32>
    %127 = arith.addf %123, %126 : vector<24x64xf32>
    %128 = arith.maximumf %108, %127 : vector<24x64xf32>
    %129 = vector.extract_strided_slice %6 {offsets = [144, 0], sizes = [24, 64], strides = [1, 1]} : vector<240x64xf32> to vector<24x64xf32>
    %cst_39 = arith.constant -5.000000e-01 : f32
    %130 = vector.broadcast %cst_39 : f32 to vector<24x64xf32>
    %131 = arith.mulf %129, %130 : vector<24x64xf32>
    %132 = vector.extract_strided_slice %6 {offsets = [168, 0], sizes = [24, 64], strides = [1, 1]} : vector<240x64xf32> to vector<24x64xf32>
    %cst_40 = arith.constant -5.000000e-01 : f32
    %133 = vector.broadcast %cst_40 : f32 to vector<24x64xf32>
    %134 = arith.mulf %132, %133 : vector<24x64xf32>
    %135 = arith.addf %131, %134 : vector<24x64xf32>
    %136 = vector.extract_strided_slice %6 {offsets = [216, 0], sizes = [24, 64], strides = [1, 1]} : vector<240x64xf32> to vector<24x64xf32>
    %cst_41 = arith.constant 1.000000e+00 : f32
    %137 = vector.broadcast %cst_41 : f32 to vector<24x64xf32>
    %138 = arith.mulf %136, %137 : vector<24x64xf32>
    %139 = arith.addf %135, %138 : vector<24x64xf32>
    %140 = arith.maximumf %128, %139 : vector<24x64xf32>
    %141 = arith.addf %140, %9 : vector<24x64xf32>
    %cst_42 = arith.constant 0.000000e+00 : f32
    %142 = vector.broadcast %cst_42 : f32 to vector<24x64xf32>
    %143 = arith.maximumf %141, %142 : vector<24x64xf32>
    %144 = tpu.concatenate %47, %85, %143 in 0 : vector<24x64xf32>, vector<24x64xf32>, vector<24x64xf32> -> vector<72x64xf32>
    %c71_i32 = arith.constant 71 : i32
    %145 = tpu.dynamic_rotate %144 by %c71_i32 dim 0 : vector<72x64xf32>, i32 -> vector<72x64xf32>
    %146 = tpu.concatenate %144, %145 in 1 : vector<72x64xf32>, vector<72x64xf32> -> vector<72x128xf32>
    %c0_43 = arith.constant 0 : index
    %c0_44 = arith.constant 0 : index
    %c0_45 = arith.constant 0 : index
    %147 = vector.load %arg5[%c0_43, %c0_44, %c0_45] : memref<3x128x64xf32, #tpu.memory_space<vmem>>, vector<1x128x64xf32>
    %148 = vector.shape_cast %147 : vector<1x128x64xf32> to vector<128x64xf32>
    %cst_46 = arith.constant dense<0.000000e+00> : vector<72x64xf32>
    %149 = tpu.matmul %146, %148, %cst_46 {dimension_numbers = #tpu.dot_dimension_numbers<[1], [0], [0], [1], [0, 0, 1, 1], [], []>} : vector<72x128xf32>, vector<128x64xf32>, vector<72x64xf32> -> vector<72x64xf32>
    %c70_i32 = arith.constant 70 : i32
    %150 = tpu.dynamic_rotate %146 by %c70_i32 dim 0 : vector<72x128xf32>, i32 -> vector<72x128xf32>
    %c1 = arith.constant 1 : index
    %c0_47 = arith.constant 0 : index
    %c0_48 = arith.constant 0 : index
    %151 = vector.load %arg5[%c1, %c0_47, %c0_48] : memref<3x128x64xf32, #tpu.memory_space<vmem>>, vector<1x128x64xf32>
    %152 = vector.shape_cast %151 : vector<1x128x64xf32> to vector<128x64xf32>
    %cst_49 = arith.constant dense<0.000000e+00> : vector<72x64xf32>
    %153 = tpu.matmul %150, %152, %cst_49 {dimension_numbers = #tpu.dot_dimension_numbers<[1], [0], [0], [1], [0, 0, 1, 1], [], []>} : vector<72x128xf32>, vector<128x64xf32>, vector<72x64xf32> -> vector<72x64xf32>
    %154 = arith.addf %149, %153 : vector<72x64xf32>
    %c68_i32 = arith.constant 68 : i32
    %155 = tpu.dynamic_rotate %146 by %c68_i32 dim 0 : vector<72x128xf32>, i32 -> vector<72x128xf32>
    %c2 = arith.constant 2 : index
    %c0_50 = arith.constant 0 : index
    %c0_51 = arith.constant 0 : index
    %156 = vector.load %arg5[%c2, %c0_50, %c0_51] : memref<3x128x64xf32, #tpu.memory_space<vmem>>, vector<1x128x64xf32>
    %157 = vector.shape_cast %156 : vector<1x128x64xf32> to vector<128x64xf32>
    %cst_52 = arith.constant dense<0.000000e+00> : vector<72x64xf32>
    %158 = tpu.matmul %155, %157, %cst_52 {dimension_numbers = #tpu.dot_dimension_numbers<[1], [0], [0], [1], [0, 0, 1, 1], [], []>} : vector<72x128xf32>, vector<128x64xf32>, vector<72x64xf32> -> vector<72x64xf32>
    %159 = arith.addf %154, %158 : vector<72x64xf32>
    %c0_53 = arith.constant 0 : index
    %c0_54 = arith.constant 0 : index
    %160 = vector.load %arg6[%c0_53, %c0_54] : memref<1x64xf32, #tpu.memory_space<vmem>>, vector<1x64xf32>
    %161 = vector.broadcast %160 : vector<1x64xf32> to vector<72x64xf32>
    %162 = arith.addf %159, %161 : vector<72x64xf32>
    %c0_55 = arith.constant 0 : index
    %c0_56 = arith.constant 0 : index
    %163 = vector.load %arg7[%c0_55, %c0_56] : memref<1x64xf32, #tpu.memory_space<vmem>>, vector<1x64xf32>
    %164 = vector.shape_cast %163 : vector<1x64xf32> to vector<1x64xf32>
    %165 = vector.broadcast %164 : vector<1x64xf32> to vector<24x64xf32>
    %166 = vector.extract_strided_slice %162 {offsets = [0, 0], sizes = [24, 64], strides = [1, 1]} : vector<72x64xf32> to vector<24x64xf32>
    %cst_57 = arith.constant 1.000000e+00 : f32
    %167 = vector.broadcast %cst_57 : f32 to vector<24x64xf32>
    %168 = arith.mulf %166, %167 : vector<24x64xf32>
    %169 = vector.extract_strided_slice %162 {offsets = [24, 0], sizes = [24, 64], strides = [1, 1]} : vector<72x64xf32> to vector<24x64xf32>
    %cst_58 = arith.constant -5.000000e-01 : f32
    %170 = vector.broadcast %cst_58 : f32 to vector<24x64xf32>
    %171 = arith.mulf %169, %170 : vector<24x64xf32>
    %172 = arith.addf %168, %171 : vector<24x64xf32>
    %173 = vector.extract_strided_slice %162 {offsets = [48, 0], sizes = [24, 64], strides = [1, 1]} : vector<72x64xf32> to vector<24x64xf32>
    %cst_59 = arith.constant -5.000000e-01 : f32
    %174 = vector.broadcast %cst_59 : f32 to vector<24x64xf32>
    %175 = arith.mulf %173, %174 : vector<24x64xf32>
    %176 = arith.addf %172, %175 : vector<24x64xf32>
    %177 = vector.extract_strided_slice %162 {offsets = [0, 0], sizes = [24, 64], strides = [1, 1]} : vector<72x64xf32> to vector<24x64xf32>
    %cst_60 = arith.constant -5.000000e-01 : f32
    %178 = vector.broadcast %cst_60 : f32 to vector<24x64xf32>
    %179 = arith.mulf %177, %178 : vector<24x64xf32>
    %180 = vector.extract_strided_slice %162 {offsets = [24, 0], sizes = [24, 64], strides = [1, 1]} : vector<72x64xf32> to vector<24x64xf32>
    %cst_61 = arith.constant 1.000000e+00 : f32
    %181 = vector.broadcast %cst_61 : f32 to vector<24x64xf32>
    %182 = arith.mulf %180, %181 : vector<24x64xf32>
    %183 = arith.addf %179, %182 : vector<24x64xf32>
    %184 = vector.extract_strided_slice %162 {offsets = [48, 0], sizes = [24, 64], strides = [1, 1]} : vector<72x64xf32> to vector<24x64xf32>
    %cst_62 = arith.constant -5.000000e-01 : f32
    %185 = vector.broadcast %cst_62 : f32 to vector<24x64xf32>
    %186 = arith.mulf %184, %185 : vector<24x64xf32>
    %187 = arith.addf %183, %186 : vector<24x64xf32>
    %188 = arith.maximumf %176, %187 : vector<24x64xf32>
    %189 = vector.extract_strided_slice %162 {offsets = [0, 0], sizes = [24, 64], strides = [1, 1]} : vector<72x64xf32> to vector<24x64xf32>
    %cst_63 = arith.constant -5.000000e-01 : f32
    %190 = vector.broadcast %cst_63 : f32 to vector<24x64xf32>
    %191 = arith.mulf %189, %190 : vector<24x64xf32>
    %192 = vector.extract_strided_slice %162 {offsets = [24, 0], sizes = [24, 64], strides = [1, 1]} : vector<72x64xf32> to vector<24x64xf32>
    %cst_64 = arith.constant -5.000000e-01 : f32
    %193 = vector.broadcast %cst_64 : f32 to vector<24x64xf32>
    %194 = arith.mulf %192, %193 : vector<24x64xf32>
    %195 = arith.addf %191, %194 : vector<24x64xf32>
    %196 = vector.extract_strided_slice %162 {offsets = [48, 0], sizes = [24, 64], strides = [1, 1]} : vector<72x64xf32> to vector<24x64xf32>
    %cst_65 = arith.constant 1.000000e+00 : f32
    %197 = vector.broadcast %cst_65 : f32 to vector<24x64xf32>
    %198 = arith.mulf %196, %197 : vector<24x64xf32>
    %199 = arith.addf %195, %198 : vector<24x64xf32>
    %200 = arith.maximumf %188, %199 : vector<24x64xf32>
    %201 = arith.addf %200, %165 : vector<24x64xf32>
    %cst_66 = arith.constant 0.000000e+00 : f32
    %202 = vector.broadcast %cst_66 : f32 to vector<24x64xf32>
    %203 = arith.maximumf %201, %202 : vector<24x64xf32>
    %c23_i32 = arith.constant 23 : i32
    %204 = tpu.dynamic_rotate %203 by %c23_i32 dim 0 : vector<24x64xf32>, i32 -> vector<24x64xf32>
    %205 = tpu.concatenate %203, %204 in 1 : vector<24x64xf32>, vector<24x64xf32> -> vector<24x128xf32>
    %c0_67 = arith.constant 0 : index
    %c0_68 = arith.constant 0 : index
    %c0_69 = arith.constant 0 : index
    %206 = vector.load %arg8[%c0_67, %c0_68, %c0_69] : memref<3x128x64xf32, #tpu.memory_space<vmem>>, vector<1x128x64xf32>
    %207 = vector.shape_cast %206 : vector<1x128x64xf32> to vector<128x64xf32>
    %cst_70 = arith.constant dense<0.000000e+00> : vector<24x64xf32>
    %208 = tpu.matmul %205, %207, %cst_70 {dimension_numbers = #tpu.dot_dimension_numbers<[1], [0], [0], [1], [0, 0, 1, 1], [], []>} : vector<24x128xf32>, vector<128x64xf32>, vector<24x64xf32> -> vector<24x64xf32>
    %c22_i32 = arith.constant 22 : i32
    %209 = tpu.dynamic_rotate %205 by %c22_i32 dim 0 : vector<24x128xf32>, i32 -> vector<24x128xf32>
    %c1_71 = arith.constant 1 : index
    %c0_72 = arith.constant 0 : index
    %c0_73 = arith.constant 0 : index
    %210 = vector.load %arg8[%c1_71, %c0_72, %c0_73] : memref<3x128x64xf32, #tpu.memory_space<vmem>>, vector<1x128x64xf32>
    %211 = vector.shape_cast %210 : vector<1x128x64xf32> to vector<128x64xf32>
    %cst_74 = arith.constant dense<0.000000e+00> : vector<24x64xf32>
    %212 = tpu.matmul %209, %211, %cst_74 {dimension_numbers = #tpu.dot_dimension_numbers<[1], [0], [0], [1], [0, 0, 1, 1], [], []>} : vector<24x128xf32>, vector<128x64xf32>, vector<24x64xf32> -> vector<24x64xf32>
    %213 = arith.addf %208, %212 : vector<24x64xf32>
    %c20_i32 = arith.constant 20 : i32
    %214 = tpu.dynamic_rotate %205 by %c20_i32 dim 0 : vector<24x128xf32>, i32 -> vector<24x128xf32>
    %c2_75 = arith.constant 2 : index
    %c0_76 = arith.constant 0 : index
    %c0_77 = arith.constant 0 : index
    %215 = vector.load %arg8[%c2_75, %c0_76, %c0_77] : memref<3x128x64xf32, #tpu.memory_space<vmem>>, vector<1x128x64xf32>
    %216 = vector.shape_cast %215 : vector<1x128x64xf32> to vector<128x64xf32>
    %cst_78 = arith.constant dense<0.000000e+00> : vector<24x64xf32>
    %217 = tpu.matmul %214, %216, %cst_78 {dimension_numbers = #tpu.dot_dimension_numbers<[1], [0], [0], [1], [0, 0, 1, 1], [], []>} : vector<24x128xf32>, vector<128x64xf32>, vector<24x64xf32> -> vector<24x64xf32>
    %218 = arith.addf %213, %217 : vector<24x64xf32>
    %c0_79 = arith.constant 0 : index
    %c0_80 = arith.constant 0 : index
    %219 = vector.load %arg9[%c0_79, %c0_80] : memref<1x64xf32, #tpu.memory_space<vmem>>, vector<1x64xf32>
    %220 = vector.broadcast %219 : vector<1x64xf32> to vector<24x64xf32>
    %221 = arith.addf %218, %220 : vector<24x64xf32>
    %cst_81 = arith.constant 0.000000e+00 : f32
    %222 = vector.broadcast %cst_81 : f32 to vector<24x64xf32>
    %223 = arith.maximumf %221, %222 : vector<24x64xf32>
    %c23_i32_82 = arith.constant 23 : i32
    %224 = tpu.dynamic_rotate %223 by %c23_i32_82 dim 0 : vector<24x64xf32>, i32 -> vector<24x64xf32>
    %225 = tpu.concatenate %223, %224 in 1 : vector<24x64xf32>, vector<24x64xf32> -> vector<24x128xf32>
    %c0_83 = arith.constant 0 : index
    %c0_84 = arith.constant 0 : index
    %c0_85 = arith.constant 0 : index
    %226 = vector.load %arg10[%c0_83, %c0_84, %c0_85] : memref<4x128x64xf32, #tpu.memory_space<vmem>>, vector<1x128x64xf32>
    %227 = vector.shape_cast %226 : vector<1x128x64xf32> to vector<128x64xf32>
    %cst_86 = arith.constant dense<0.000000e+00> : vector<24x64xf32>
    %228 = tpu.matmul %225, %227, %cst_86 {dimension_numbers = #tpu.dot_dimension_numbers<[1], [0], [0], [1], [0, 0, 1, 1], [], []>} : vector<24x128xf32>, vector<128x64xf32>, vector<24x64xf32> -> vector<24x64xf32>
    %c22_i32_87 = arith.constant 22 : i32
    %229 = tpu.dynamic_rotate %225 by %c22_i32_87 dim 0 : vector<24x128xf32>, i32 -> vector<24x128xf32>
    %c1_88 = arith.constant 1 : index
    %c0_89 = arith.constant 0 : index
    %c0_90 = arith.constant 0 : index
    %230 = vector.load %arg10[%c1_88, %c0_89, %c0_90] : memref<4x128x64xf32, #tpu.memory_space<vmem>>, vector<1x128x64xf32>
    %231 = vector.shape_cast %230 : vector<1x128x64xf32> to vector<128x64xf32>
    %cst_91 = arith.constant dense<0.000000e+00> : vector<24x64xf32>
    %232 = tpu.matmul %229, %231, %cst_91 {dimension_numbers = #tpu.dot_dimension_numbers<[1], [0], [0], [1], [0, 0, 1, 1], [], []>} : vector<24x128xf32>, vector<128x64xf32>, vector<24x64xf32> -> vector<24x64xf32>
    %233 = arith.addf %228, %232 : vector<24x64xf32>
    %c20_i32_92 = arith.constant 20 : i32
    %234 = tpu.dynamic_rotate %225 by %c20_i32_92 dim 0 : vector<24x128xf32>, i32 -> vector<24x128xf32>
    %c2_93 = arith.constant 2 : index
    %c0_94 = arith.constant 0 : index
    %c0_95 = arith.constant 0 : index
    %235 = vector.load %arg10[%c2_93, %c0_94, %c0_95] : memref<4x128x64xf32, #tpu.memory_space<vmem>>, vector<1x128x64xf32>
    %236 = vector.shape_cast %235 : vector<1x128x64xf32> to vector<128x64xf32>
    %cst_96 = arith.constant dense<0.000000e+00> : vector<24x64xf32>
    %237 = tpu.matmul %234, %236, %cst_96 {dimension_numbers = #tpu.dot_dimension_numbers<[1], [0], [0], [1], [0, 0, 1, 1], [], []>} : vector<24x128xf32>, vector<128x64xf32>, vector<24x64xf32> -> vector<24x64xf32>
    %238 = arith.addf %233, %237 : vector<24x64xf32>
    %c18_i32 = arith.constant 18 : i32
    %239 = tpu.dynamic_rotate %225 by %c18_i32 dim 0 : vector<24x128xf32>, i32 -> vector<24x128xf32>
    %c3 = arith.constant 3 : index
    %c0_97 = arith.constant 0 : index
    %c0_98 = arith.constant 0 : index
    %240 = vector.load %arg10[%c3, %c0_97, %c0_98] : memref<4x128x64xf32, #tpu.memory_space<vmem>>, vector<1x128x64xf32>
    %241 = vector.shape_cast %240 : vector<1x128x64xf32> to vector<128x64xf32>
    %cst_99 = arith.constant dense<0.000000e+00> : vector<24x64xf32>
    %242 = tpu.matmul %239, %241, %cst_99 {dimension_numbers = #tpu.dot_dimension_numbers<[1], [0], [0], [1], [0, 0, 1, 1], [], []>} : vector<24x128xf32>, vector<128x64xf32>, vector<24x64xf32> -> vector<24x64xf32>
    %243 = arith.addf %238, %242 : vector<24x64xf32>
    %c0_100 = arith.constant 0 : index
    %c0_101 = arith.constant 0 : index
    %244 = vector.load %arg11[%c0_100, %c0_101] : memref<1x64xf32, #tpu.memory_space<vmem>>, vector<1x64xf32>
    %245 = vector.broadcast %244 : vector<1x64xf32> to vector<24x64xf32>
    %246 = arith.addf %243, %245 : vector<24x64xf32>
    %cst_102 = arith.constant 0.000000e+00 : f32
    %247 = vector.broadcast %cst_102 : f32 to vector<24x64xf32>
    %248 = arith.maximumf %246, %247 : vector<24x64xf32>
    %c0_103 = arith.constant 0 : index
    %c0_104 = arith.constant 0 : index
    %249 = vector.load %arg12[%c0_103, %c0_104] : memref<64x5xf32, #tpu.memory_space<vmem>>, vector<64x5xf32>
    %cst_105 = arith.constant dense<0.000000e+00> : vector<24x5xf32>
    %250 = tpu.matmul %248, %249, %cst_105 {dimension_numbers = #tpu.dot_dimension_numbers<[1], [0], [0], [1], [0, 0, 1, 1], [], []>} : vector<24x64xf32>, vector<64x5xf32>, vector<24x5xf32> -> vector<24x5xf32>
    %c0_106 = arith.constant 0 : index
    %c0_107 = arith.constant 0 : index
    %251 = vector.load %arg13[%c0_106, %c0_107] : memref<1x5xf32, #tpu.memory_space<vmem>>, vector<1x5xf32>
    %252 = vector.broadcast %251 : vector<1x5xf32> to vector<24x5xf32>
    %253 = arith.addf %250, %252 : vector<24x5xf32>
    %254 = vector.extract_strided_slice %248 {offsets = [0, 0], sizes = [8, 64], strides = [1, 1]} : vector<24x64xf32> to vector<8x64xf32>
    %c0_108 = arith.constant 0 : index
    %c0_109 = arith.constant 0 : index
    %c0_110 = arith.constant 0 : index
    %255 = vector.load %arg15[%c0_108, %c0_109, %c0_110] : memref<1x8x64xf32, #tpu.memory_space<vmem>>, vector<1x8x64xf32>
    %256 = vector.shape_cast %255 : vector<1x8x64xf32> to vector<8x64xf32>
    %257 = vector.shape_cast %254 : vector<8x64xf32> to vector<1x8x64xf32>
    tpu.vector_store %arg15[%c0_108, %c0_109, %c0_110], %257 {strides = array<i32>} : memref<1x8x64xf32, #tpu.memory_space<vmem>>, vector<1x8x64xf32>,
    %258 = vector.extract_strided_slice %253 {offsets = [0, 0], sizes = [8, 5], strides = [1, 1]} : vector<24x5xf32> to vector<8x5xf32>
    %c0_111 = arith.constant 0 : index
    %c0_112 = arith.constant 0 : index
    %c0_113 = arith.constant 0 : index
    %259 = vector.load %arg14[%c0_111, %c0_112, %c0_113] : memref<1x8x5xf32, #tpu.memory_space<vmem>>, vector<1x8x5xf32>
    %260 = vector.shape_cast %259 : vector<1x8x5xf32> to vector<8x5xf32>
    %261 = vector.shape_cast %258 : vector<8x5xf32> to vector<1x8x5xf32>
    tpu.vector_store %arg14[%c0_111, %c0_112, %c0_113], %261 {strides = array<i32>} : memref<1x8x5xf32, #tpu.memory_space<vmem>>, vector<1x8x5xf32>,
    return
  }
  func.func @transform_0(%arg0: i32) -> (i32, i32, i32) {
    %c0_i32 = arith.constant 0 : i32
    %c0_i32_0 = arith.constant 0 : i32
    %c0_i32_1 = arith.constant 0 : i32
    return %arg0, %c0_i32, %c0_i32_0 : i32, i32, i32
  }
  func.func @transform_1(%arg0: i32) -> (i32, i32) {
    %c0_i32 = arith.constant 0 : i32
    %c0_i32_0 = arith.constant 0 : i32
    %c0_i32_1 = arith.constant 0 : i32
    return %c0_i32, %c0_i32_0 : i32, i32
  }
  func.func @transform_2(%arg0: i32) -> (i32, i32) {
    %c0_i32 = arith.constant 0 : i32
    %c0_i32_0 = arith.constant 0 : i32
    %c0_i32_1 = arith.constant 0 : i32
    return %c0_i32, %c0_i32_0 : i32, i32
  }
  func.func @transform_3(%arg0: i32) -> (i32, i32) {
    %c0_i32 = arith.constant 0 : i32
    %c0_i32_0 = arith.constant 0 : i32
    %c0_i32_1 = arith.constant 0 : i32
    return %c0_i32, %c0_i32_0 : i32, i32
  }
  func.func @transform_4(%arg0: i32) -> (i32, i32, i32) {
    %c0_i32 = arith.constant 0 : i32
    %c0_i32_0 = arith.constant 0 : i32
    %c0_i32_1 = arith.constant 0 : i32
    %c0_i32_2 = arith.constant 0 : i32
    return %c0_i32, %c0_i32_0, %c0_i32_1 : i32, i32, i32
  }
  func.func @transform_5(%arg0: i32) -> (i32, i32) {
    %c0_i32 = arith.constant 0 : i32
    %c0_i32_0 = arith.constant 0 : i32
    %c0_i32_1 = arith.constant 0 : i32
    return %c0_i32, %c0_i32_0 : i32, i32
  }
  func.func @transform_6(%arg0: i32) -> (i32, i32) {
    %c0_i32 = arith.constant 0 : i32
    %c0_i32_0 = arith.constant 0 : i32
    %c0_i32_1 = arith.constant 0 : i32
    return %c0_i32, %c0_i32_0 : i32, i32
  }
  func.func @transform_7(%arg0: i32) -> (i32, i32, i32) {
    %c0_i32 = arith.constant 0 : i32
    %c0_i32_0 = arith.constant 0 : i32
    %c0_i32_1 = arith.constant 0 : i32
    %c0_i32_2 = arith.constant 0 : i32
    return %c0_i32, %c0_i32_0, %c0_i32_1 : i32, i32, i32
  }
  func.func @transform_8(%arg0: i32) -> (i32, i32) {
    %c0_i32 = arith.constant 0 : i32
    %c0_i32_0 = arith.constant 0 : i32
    %c0_i32_1 = arith.constant 0 : i32
    return %c0_i32, %c0_i32_0 : i32, i32
  }
  func.func @transform_9(%arg0: i32) -> (i32, i32, i32) {
    %c0_i32 = arith.constant 0 : i32
    %c0_i32_0 = arith.constant 0 : i32
    %c0_i32_1 = arith.constant 0 : i32
    %c0_i32_2 = arith.constant 0 : i32
    return %c0_i32, %c0_i32_0, %c0_i32_1 : i32, i32, i32
  }
  func.func @transform_10(%arg0: i32) -> (i32, i32) {
    %c0_i32 = arith.constant 0 : i32
    %c0_i32_0 = arith.constant 0 : i32
    %c0_i32_1 = arith.constant 0 : i32
    return %c0_i32, %c0_i32_0 : i32, i32
  }
  func.func @transform_11(%arg0: i32) -> (i32, i32) {
    %c0_i32 = arith.constant 0 : i32
    %c0_i32_0 = arith.constant 0 : i32
    %c0_i32_1 = arith.constant 0 : i32
    return %c0_i32, %c0_i32_0 : i32, i32
  }
  func.func @transform_12(%arg0: i32) -> (i32, i32) {
    %c0_i32 = arith.constant 0 : i32
    %c0_i32_0 = arith.constant 0 : i32
    %c0_i32_1 = arith.constant 0 : i32
    return %c0_i32, %c0_i32_0 : i32, i32
  }
  func.func @transform_13(%arg0: i32) -> (i32, i32, i32) {
    %c0_i32 = arith.constant 0 : i32
    %c0_i32_0 = arith.constant 0 : i32
    %c0_i32_1 = arith.constant 0 : i32
    return %arg0, %c0_i32, %c0_i32_0 : i32, i32, i32
  }
  func.func @transform_14(%arg0: i32) -> (i32, i32, i32) {
    %c0_i32 = arith.constant 0 : i32
    %c0_i32_0 = arith.constant 0 : i32
    %c0_i32_1 = arith.constant 0 : i32
    return %arg0, %c0_i32, %c0_i32_0 : i32, i32, i32
  }
}

</mosaic_0001>

<bundles_post_ra>
// kernel: _lambda_.1
= control target key start
LH: loop header
LB: loop body
LE: loop exit
PB: predicated region body
PF: predicated region fallthrough
CT: control target
= control target key end

     0   :  { %s3862_s29 = smov 0   ;;  %s5122_s0 = inlined_call_operand.vmem [shape: f32[2,240,9], index: 0, kind: input, shape index: {}]   ;;  %s5123_s1 = inlined_call_operand.vmem [shape: f32[9,64], index: 1, kind: input, shape index: {}]   ;;  %s5124_s2 = inlined_call_operand.vmem [shape: f32[1,64], index: 2, kind: input, shape index: {}]   ;;  %s5125_s3 = inlined_call_operand.vmem [shape: f32[1,64], index: 3, kind: input, shape index: {}]   ;;  %s5126_s4 = inlined_call_operand.vmem [shape: f32[3,128,64], index: 4, kind: input, shape index: {}]   ;;  %s5127_s5 = inlined_call_operand.vmem [shape: f32[1,64], index: 5, kind: input, shape index: {}]   ;;  %s5128_s6 = inlined_call_operand.vmem [shape: f32[1,64], index: 6, kind: input, shape index: {}]   ;;  %s5129_s7 = inlined_call_operand.vmem [shape: f32[3,128,64], index: 7, kind: input, shape index: {}]   ;;  %s5130_s8 = inlined_call_operand.vmem [shape: f32[1,64], index: 8, kind: input, shape index: {}]   ;;  %s5131_s9 = inlined_call_operand.vmem [shape: f32[4,128,64], index: 9, kind: input, shape index: {}]   ;;  %s5132_s10 = inlined_call_operand.vmem [shape: f32[1,64], index: 10, kind: input, shape index: {}]   ;;  %s5133_s11 = inlined_call_operand.vmem [shape: f32[64,5], index: 11, kind: input, shape index: {}]   ;;  %s5134_s12 = inlined_call_operand.vmem [shape: f32[1,5], index: 12, kind: input, shape index: {}]   ;;  %s5135_s13 = inlined_call_operand.vmem [shape: f32[2,8,5], index: 13, kind: output, shape index: {0}]   ;;  %s5136_s14 = inlined_call_operand.vmem [shape: f32[2,8,64], index: 14, kind: output, shape index: {1}]  }
   0x1 LB: > { %s2525_s30 = sadd.s32 4294967295, %s3780_s29   ;;  %p2529_p0 = scmp.ge.s32.totalorder %s3780_s29, 1  ;;  %s3780_s29 = sphi %s3862_s29, %s25_s29  }
   0x2   : > { %p415_p1 = scmp.lt.s32.totalorder %s3780_s29, 3 }
   0x4   : > { %p416_p2 = pnand %p2529_p0, %p415_p1 }
   0x5   : > { %v507_v0 = vld [vmem:[%s5123_s1] sm:$0xff] (!%p416_p2)  ;;  %v508_v1 = vld [vmem:[%s5123_s1 + $0x8] sm:$0x1] (!%p416_p2)  ;;  %vm607_vm0 = vcmask (!%p416_p2), 1040384   ;;  %p464_p3 = scmp.lt.s32.totalorder (!%p416_p2), %s2525_s30, 1  ;;  %vm3782_vm1 = vmmov (!%p416_p2), 1  }
   0x6   : > { %419 = sbr.rel (%p416_p2) target bundleno = 1687 (0x697), region = 72  ;;  %v3477_v2 = vpack.c.bf16 (!%p416_p2), %v508_v1, %v507_v0  ;;  %vm3478_vm2 = vmpackc.low (!%p416_p2), %vm607_vm0, %vm3782_vm1  ;;  %vm516_vm3 = vcmask (!%p416_p2), 72704   ;;  %v1062_v33 = vld [vmem:[%s5126_s4] sm:$0xff] (!%p416_p2)  ;;  %v1063_v34 = vld [vmem:[%s5126_s4 + $0x8] sm:$0xff] (!%p416_p2)  ;;  %v5137_v36 = vmov (!%p416_p2), 0.0|0.0   ;;  %vm3784_vm5 = vmmov (!%p416_p2), 0  }
   0x7   : > { %v2566_v35 = vld [vmem:[%s5126_s4 + $0x80] sm:$0xff] (!%p416_p2)  ;;  %v3508_v37 = vpack.c.bf16 (!%p416_p2), %v1063_v34, %v1062_v33  ;;  %v2567_v38 = vld [vmem:[%s5126_s4 + $0x88] sm:$0xff] (!%p416_p2)  ;;  %v1064_v39 = vld [vmem:[%s5126_s4 + $0x10] sm:$0xff] (!%p416_p2)  ;;  %s3786_s21 = smov (!%p416_p2), 64   ;;  %vm1052_vm6 = vcmask (!%p416_p2), 523264   ;;  %vm2439_vm10 = vcmask (!%p416_p2), 39936  }
   0x8   : > { %3479 = vmatprep.subr.msk.bf16.mxu0 (!%p416_p2), %vm3478_vm2, %v3477_v2  ;;  %3735 = vmatprep.subr.msk.bf16.mxu1 (!%p416_p2), %vm3478_vm2, %v3477_v2  ;;  %v1065_v40 = vld [vmem:[%s5126_s4 + $0x18] sm:$0xff] (!%p416_p2)  ;;  %v3484_v41 = vpack.c.bf16 (!%p416_p2), %v2567_v38, %v2566_v35  ;;  %v2568_v42 = vld [vmem:[%s5126_s4 + $0x90] sm:$0xff] (!%p416_p2)  ;;  %v1066_v46 = vld [vmem:[%s5126_s4 + $0x20] sm:$0xff] (!%p416_p2) }
   0x9   : > { %3482 = vmatpush3.bf16.msk.msra.mxu0 (!%p416_p2), %vm3478_vm2, %v3477_v2  ;;  %3736 = vmatpush3.bf16.msk.msra.mxu1 (!%p416_p2), %vm3478_vm2, %v3477_v2  ;;  %v2569_v43 = vld [vmem:[%s5126_s4 + $0x98] sm:$0xff] (!%p416_p2)  ;;  %v3511_v44 = vpack.c.bf16 (!%p416_p2), %v1065_v40, %v1064_v39  ;;  %v1067_v47 = vld [vmem:[%s5126_s4 + $0x28] sm:$0xff] (!%p416_p2)  ;;  %v2570_v48 = vld [vmem:[%s5126_s4 + $0xa0] sm:$0xff] (!%p416_p2) }
   0xa   : > { %3507 = vmatprep.subr.bf16.mxu0 (!%p416_p2), %v5137_v36  ;;  %3483 = vmatprep.subr.bf16.mxu1 (!%p416_p2), %v5137_v36  ;;  %v3487_v45 = vpack.c.bf16 (!%p416_p2), %v2569_v43, %v2568_v42  ;;  %v2571_v49 = vld [vmem:[%s5126_s4 + $0xa8] sm:$0xff] (!%p416_p2)  ;;  %v3514_v50 = vpack.c.bf16 (!%p416_p2), %v1067_v47, %v1066_v46  ;;  %v1068_v52 = vld [vmem:[%s5126_s4 + $0x30] sm:$0xff] (!%p416_p2)  ;;  %v1069_v53 = vld [vmem:[%s5126_s4 + $0x38] sm:$0xff] (!%p416_p2) }
   0xb   : > { %v3490_v51 = vpack.c.bf16 (!%p416_p2), %v2571_v49, %v2570_v48  ;;  %v2572_v54 = vld [vmem:[%s5126_s4 + $0xb0] sm:$0xff] (!%p416_p2)  ;;  %v2573_v55 = vld [vmem:[%s5126_s4 + $0xb8] sm:$0xff] (!%p416_p2)  ;;  %v3517_v56 = vpack.c.bf16 (!%p416_p2), %v1069_v53, %v1068_v52  ;;  %v1070_v58 = vld [vmem:[%s5126_s4 + $0x40] sm:$0xff] (!%p416_p2) }
   0xc   : > { %v3493_v57 = vpack.c.bf16 (!%p416_p2), %v2573_v55, %v2572_v54  ;;  %v1071_v59 = vld [vmem:[%s5126_s4 + $0x48] sm:$0xff] (!%p416_p2)  ;;  %v2574_v60 = vld [vmem:[%s5126_s4 + $0xc0] sm:$0xff] (!%p416_p2)  ;;  %v1072_v0 = vld [vmem:[%s5126_s4 + $0x50] sm:$0xff] (!%p416_p2) }
   0xd   : > { %s5142_s30 = smov (!%p464_p3, %s2525_s30), 1  ;;  %v2575_v61 = vld [vmem:[%s5126_s4 + $0xc8] sm:$0xff]  ;;  %v3520_v62 = vpack.c.bf16 %v1071_v59, %v1070_v58  ;;  %v1073_v1 = vld [vmem:[%s5126_s4 + $0x58] sm:$0xff]  ;;  %v2576_v2 = vld [vmem:[%s5126_s4 + $0xd0] sm:$0xff] }
   0xe   : > { %s3745_s19 = smul.u32 240, %s5142_s30  ;;  %v3496_v63 = vpack.c.bf16 %v2575_v61, %v2574_v60  ;;  %s2531_s23 = sshll.u32 %s5142_s30, 3 }
   0xf   : > { %s476_s26 = scalar_lea.vmem %s5136_s14, %s2531_s23  ;;  %s472_s16 = scalar_lea.vmem %s5135_s13, %s2531_s23 }
  0x10   : > { %s3882_s22 = scalar_lea.vmem %s5122_s0, %s3745_s19 }
  0x11   : > { %v477_v3 = vld [vmem:[%s3882_s22] sm:$0xff]  ;;  %v478_v5 = vld [vmem:[%s3882_s22 + $0x8] sm:$0xff]  ;;  %v479_v7 = vld [vmem:[%s3882_s22 + $0x10] sm:$0xff] }
  0x12   : > { %v493_v4 = vld [vmem:[%s3882_s22 + $0x80] sm:$0xff]  ;;  %2943 = vmatprep.mubr.msk.f32.mxu0 %vm516_vm3, %v477_v3  ;;  %v494_v6 = vld [vmem:[%s3882_s22 + $0x88] sm:$0xff]  ;;  %v495_v8 = vld [vmem:[%s3882_s22 + $0x90] sm:$0xff] }
  0x13   : > { %2967 = vmatprep.mubr.msk.f32.mxu1 %vm516_vm3, %v493_v4  ;;  %2944 = vmatmul.mubr.msk.f32.vlgmr.msra.gmra.mrb[0].mxu0 %vm516_vm3, %v478_v5  ;;  %v480_v9 = vld [vmem:[%s3882_s22 + $0x18] sm:$0xff]  ;;  %v481_v11 = vld [vmem:[%s3882_s22 + $0x20] sm:$0xff]  ;;  %v482_v13 = vld [vmem:[%s3882_s22 + $0x28] sm:$0xff]  ;;  %v3523_v4 = vpack.c.bf16 %v1073_v1, %v1072_v0 }
  0x14   : > { %2968 = vmatmul.mubr.msk.f32.vlgmr.msra.gmra.mrb[0].mxu1 %vm516_vm3, %v494_v6  ;;  %2946 = vmatprep.mubr.msk.f32.mxu0 %vm516_vm3, %v479_v7  ;;  %v496_v10 = vld [vmem:[%s3882_s22 + $0x98] sm:$0xff]  ;;  %v497_v12 = vld [vmem:[%s3882_s22 + $0xa0] sm:$0xff]  ;;  %v498_v14 = vld [vmem:[%s3882_s22 + $0xa8] sm:$0xff] }
  0x15   : > { %2970 = vmatprep.mubr.msk.f32.mxu1 %vm516_vm3, %v495_v8  ;;  %v483_v15 = vld [vmem:[%s3882_s22 + $0x30] sm:$0xff]  ;;  %v484_v17 = vld [vmem:[%s3882_s22 + $0x38] sm:$0xff]  ;;  %v485_v19 = vld [vmem:[%s3882_s22 + $0x40] sm:$0xff]  ;;  %3509 = vmatpush3.bf16.msra.mxu0 %v3508_v37 }
  0x16   : > { %v499_v16 = vld [vmem:[%s3882_s22 + $0xb0] sm:$0xff]  ;;  %v500_v18 = vld [vmem:[%s3882_s22 + $0xb8] sm:$0xff]  ;;  %v501_v20 = vld [vmem:[%s3882_s22 + $0xc0] sm:$0xff]  ;;  %3485 = vmatpush3.bf16.msra.mxu1 %v3484_v41  ;;  %3510 = vmatprep.subr.bf16.mxu0 %v5137_v36 }
  0x17   : > { %2947 = vmatmul.mubr.msk.f32.gmra.mrb[2].mxu0 %vm516_vm3, %v480_v9  ;;  %v486_v21 = vld [vmem:[%s3882_s22 + $0x48] sm:$0xff]  ;;  %v487_v23 = vld [vmem:[%s3882_s22 + $0x50] sm:$0xff]  ;;  %v488_v25 = vld [vmem:[%s3882_s22 + $0x58] sm:$0xff]  ;;  %3486 = vmatprep.subr.bf16.mxu1 %v5137_v36 }
  0x18   : > { %2971 = vmatmul.mubr.msk.f32.gmra.mrb[2].mxu1 %vm516_vm3, %v496_v10  ;;  %2949 = vmatprep.mubr.msk.f32.mxu0 %vm516_vm3, %v481_v11  ;;  %v502_v22 = vld [vmem:[%s3882_s22 + $0xc8] sm:$0xff]  ;;  %v503_v24 = vld [vmem:[%s3882_s22 + $0xd0] sm:$0xff]  ;;  %v504_v26 = vld [vmem:[%s3882_s22 + $0xd8] sm:$0xff] }
  0x19   : > { %2973 = vmatprep.mubr.msk.f32.mxu1 %vm516_vm3, %v497_v12  ;;  %v489_v27 = vld [vmem:[%s3882_s22 + $0x60] sm:$0xff]  ;;  %v490_v29 = vld [vmem:[%s3882_s22 + $0x68] sm:$0xff]  ;;  %v491_v31 = vld [vmem:[%s3882_s22 + $0x70] sm:$0xff]  ;;  %3512 = vmatpush3.bf16.msra.mxu0 %v3511_v44 }
  0x1a   : > { %v505_v28 = vld [vmem:[%s3882_s22 + $0xe0] sm:$0xff]  ;;  %v506_v30 = vld [vmem:[%s3882_s22 + $0xe8] sm:$0xff]  ;;  %v492_v32 = vld [vmem:[%s3882_s22 + $0x78] sm:$0xff]  ;;  %3488 = vmatpush3.bf16.msra.mxu1 %v3487_v45  ;;  %3513 = vmatprep.subr.bf16.mxu0 %v5137_v36 }
  0x1b   : > { %2950 = vmatmul.mubr.msk.f32.gmra.mrb[4].mxu0 %vm516_vm3, %v482_v13  ;;  %3489 = vmatprep.subr.bf16.mxu1 %v5137_v36  ;;  %v2577_v3 = vld [vmem:[%s5126_s4 + $0xd8] sm:$0xff]  ;;  %v1074_v6 = vld [vmem:[%s5126_s4 + $0x60] sm:$0xff]  ;;  %v1075_v7 = vld [vmem:[%s5126_s4 + $0x68] sm:$0xff] }
  0x1c   : > { %2974 = vmatmul.mubr.msk.f32.gmra.mrb[4].mxu1 %vm516_vm3, %v498_v14  ;;  %2952 = vmatprep.mubr.msk.f32.mxu0 %vm516_vm3, %v483_v15  ;;  %v3499_v5 = vpack.c.bf16 %v2577_v3, %v2576_v2  ;;  %v2578_v8 = vld [vmem:[%s5126_s4 + $0xe0] sm:$0xff]  ;;  %v2579_v9 = vld [vmem:[%s5126_s4 + $0xe8] sm:$0xff]  ;;  %v3526_v10 = vpack.c.bf16 %v1075_v7, %v1074_v6 }
  0x1d   : > { %2976 = vmatprep.mubr.msk.f32.mxu1 %vm516_vm3, %v499_v16  ;;  %3515 = vmatpush3.bf16.msra.mxu0 %v3514_v50  ;;  %v3502_v11 = vpack.c.bf16 %v2579_v9, %v2578_v8  ;;  %v4047_v12 = vld [vmem:[%s5124_s2] ss:$0 sm:$0xff] }
  0x1e   : > { %3491 = vmatpush3.bf16.msra.mxu1 %v3490_v51  ;;  %3516 = vmatprep.subr.bf16.mxu0 %v5137_v36 }
  0x1f   : > { %2953 = vmatmul.mubr.msk.f32.gmra.mrb[6].mxu0 %vm516_vm3, %v484_v17  ;;  %3492 = vmatprep.subr.bf16.mxu1 %v5137_v36 }
  0x20   : > { %2977 = vmatmul.mubr.msk.f32.gmra.mrb[6].mxu1 %vm516_vm3, %v500_v18  ;;  %2955 = vmatprep.mubr.msk.f32.mxu0 %vm516_vm3, %v485_v19 }
  0x21   : > { %2979 = vmatprep.mubr.msk.f32.mxu1 %vm516_vm3, %v501_v20  ;;  %3518 = vmatpush3.bf16.msra.mxu0 %v3517_v56 }
  0x22   : > { %3494 = vmatpush3.bf16.msra.mxu1 %v3493_v57  ;;  %3519 = vmatprep.subr.bf16.mxu0 %v5137_v36 }
  0x23   : > { %2956 = vmatmul.mubr.msk.f32.gmra.mrb[8].mxu0 %vm516_vm3, %v486_v21  ;;  %3495 = vmatprep.subr.bf16.mxu1 %v5137_v36 }
  0x24   : > { %2980 = vmatmul.mubr.msk.f32.gmra.mrb[8].mxu1 %vm516_vm3, %v502_v22  ;;  %2958 = vmatprep.mubr.msk.f32.mxu0 %vm516_vm3, %v487_v23 }
  0x25   : > { %2982 = vmatprep.mubr.msk.f32.mxu1 %vm516_vm3, %v503_v24  ;;  %3521 = vmatpush3.bf16.msra.mxu0 %v3520_v62 }
  0x26   : > { %3497 = vmatpush3.bf16.msra.mxu1 %v3496_v63  ;;  %3522 = vmatprep.subr.bf16.mxu0 %v5137_v36 }
  0x27   : > { %2959 = vmatmul.mubr.msk.f32.gmra.mrb[10].mxu0 %vm516_vm3, %v488_v25  ;;  %3498 = vmatprep.subr.bf16.mxu1 %v5137_v36 }
  0x28   : > { %2983 = vmatmul.mubr.msk.f32.gmra.mrb[10].mxu1 %vm516_vm3, %v504_v26  ;;  %2961 = vmatprep.mubr.msk.f32.mxu0 %vm516_vm3, %v489_v27 }
  0x29   : > { %2985 = vmatprep.mubr.msk.f32.mxu1 %vm516_vm3, %v505_v28  ;;  %3524 = vmatpush3.bf16.msra.mxu0 %v3523_v4 }
  0x2a   : > { %3500 = vmatpush3.bf16.msra.mxu1 %v3499_v5  ;;  %3525 = vmatprep.subr.bf16.mxu0 %v5137_v36 }
  0x2b   : > { %2962 = vmatmul.mubr.msk.f32.gmra.mrb[12].mxu0 %vm516_vm3, %v490_v29  ;;  %3501 = vmatprep.subr.bf16.mxu1 %v5137_v36 }
  0x2c   : > { %2986 = vmatmul.mubr.msk.f32.gmra.mrb[12].mxu1 %vm516_vm3, %v506_v30  ;;  %2964 = vmatprep.mubr.msk.f32.mxu0 %vm516_vm3, %v491_v31 }
  0x2d   : > { %3527 = vmatpush3.bf16.msra.mxu0 %v3526_v10 }
  0x2e   : > { %3503 = vmatpush3.bf16.msra.mxu1 %v3502_v11  ;;  %3528 = vmatprep.subr.bf16.mxu0 %v5137_v36 }
  0x2f   : > { %2965 = vmatmul.mubr.msk.f32.gmra.mrb[14].mxu0 %vm516_vm3, %v492_v32  ;;  %3504 = vmatprep.subr.bf16.mxu1 %v5137_v36 }
  0xe6   : > { %v2945_v13 = vpop.f32.mrb[0].mxu0 }
  0xe7   : > { %v2969_v14 = vpop.f32.mrb[0].mxu1  ;;  %v677_v15 = vpop.f32.mrb[1].mxu0  ;;  %v683_v18 = vadd.f32 %v2945_v13, %v4047_v12 }
  0xe8   : > { %v757_v16 = vpop.f32.mrb[1].mxu1  ;;  %v678_v17 = vadd.f32 %v4047_v12, %v677_v15  ;;  %v4075_v41 = vadd.f32 %v2969_v14, %v4047_v12 }
  0xe9   : > { %v4052_v19 = vadd.f32 %v4047_v12, %v757_v16  ;;  %v4055_v27 = vmul.f32 -0.33333334, %v683_v18  ;;  %v4057_v28 = vmul.f32 -0.28867513, %v683_v18  ;;  %v852_v40 = vmul.f32 -0.4082483, %v683_v18 }
  0xea   : > { %v2948_v20 = vpop.f32.mrb[2].mxu0  ;;  %v851_v21 = vmul.f32 -0.4082483, %v678_v17  ;;  %v4059_v29 = vmul.f32 -0.33333334, %v678_v17 }
  0xeb   : > { %v2972_v22 = vpop.f32.mrb[2].mxu1  ;;  %v693_v23 = vadd.f32 %v2948_v20, %v4047_v12  ;;  %v687_v24 = vpop.f32.mrb[3].mxu0  ;;  %v4068_v37 = vmul.f32 -0.28867513, %v678_v17  ;;  %v4071_v38 = vmul.f32 -0.70710677, %v4052_v19 }
  0xec   : > { %v767_v25 = vpop.f32.mrb[3].mxu1  ;;  %v688_v30 = vadd.f32 %v4047_v12, %v687_v24  ;;  %v4063_v33 = vadd.f32 %v2972_v22, %v4047_v12 }
  0xed   : > { %v833_v31 = vmul.f32 -0.4082483, %v693_v23  ;;  %v854_v32 = vadd.f32 %v851_v21, %v693_v23  ;;  %v4066_v34 = vadd.f32 %v4047_v12, %v767_v25  ;;  %v866_v1 = vmul.f32 -0.70710677, %v693_v23 }
  0xee   : > { %v2951_v35 = vpop.f32.mrb[4].mxu0  ;;  %v4079_v43 = vmul.f32 -0.33333334, %v688_v30  ;;  %v853_v44 = vmul.f32 -0.4082483, %v688_v30  ;;  %v975_v52 = vmul.f32 -0.5, %v4063_v33 }
  0xef   : > { %v703_v39 = vadd.f32 %v2951_v35, %v4047_v12  ;;  %v4077_v42 = vadd.f32 %v833_v31, %v678_v17  ;;  %v2975_v45 = vpop.f32.mrb[4].mxu1  ;;  %v697_v46 = vpop.f32.mrb[5].mxu0  ;;  %v4081_v47 = vmul.f32 -0.28867513, %v688_v30  ;;  %v4089_v53 = vmul.f32 -0.35355338, %v4066_v34 }
  0xf0   : > { %v4084_v49 = vadd.f32 %v2975_v45, %v4047_v12  ;;  %v698_v50 = vadd.f32 %v4047_v12, %v697_v46  ;;  %v777_v51 = vpop.f32.mrb[5].mxu1  ;;  %v974_v54 = vmul.f32 -0.5, %v4066_v34 }
  0xf1   : > { %v835_v48 = vmul.f32 -0.4082483, %v703_v39  ;;  %v856_v55 = vadd.f32 %v853_v44, %v703_v39  ;;  %v4096_v61 = vadd.f32 %v4047_v12, %v777_v51  ;;  %v868_v3 = vmul.f32 -0.70710677, %v703_v39 }
  0xf2   : > { %v2954_v56 = vpop.f32.mrb[6].mxu0  ;;  %v977_v59 = vmul.f32 -0.5, %v4084_v49  ;;  %v834_v60 = vmul.f32 -0.4082483, %v698_v50  ;;  %v855_v63 = vadd.f32 %v852_v40, %v698_v50  ;;  %v867_v5 = vmul.f32 -0.70710677, %v698_v50 }
  0xf3   : > { %v2978_v57 = vpop.f32.mrb[6].mxu1  ;;  %v4092_v58 = vadd.f32 %v835_v48, %v688_v30  ;;  %v707_v62 = vpop.f32.mrb[7].mxu0  ;;  %v713_v0 = vadd.f32 %v2954_v56, %v4047_v12  ;;  %v962_v8 = vmul.f32 -0.35355338, %v4084_v49  ;;  %v4110_v15 = vmul.f32 -0.35355338, %v4096_v61 }
  0xf4   : > { %v787_v2 = vpop.f32.mrb[7].mxu1  ;;  %v4099_v4 = vadd.f32 %v834_v60, %v683_v18  ;;  %v4102_v6 = vadd.f32 %v2978_v57, %v4047_v12  ;;  %v708_v7 = vadd.f32 %v4047_v12, %v707_v62  ;;  %v980_v14 = vadd.f32 %v977_v59, %v974_v54 }
  0xf5   : > { %v858_v9 = vmul.f32 -0.70710677, %v713_v0  ;;  %v4107_v10 = vadd.f32 %v4047_v12, %v787_v2  ;;  %v4112_v16 = vadd.f32 %v867_v5, %v713_v0  ;;  %v976_v21 = vmul.f32 -0.5, %v4096_v61 }
  0xf6   : > { %v2957_v11 = vpop.f32.mrb[8].mxu0  ;;  %v979_v17 = vmul.f32 -0.5, %v4102_v6  ;;  %v857_v18 = vmul.f32 -0.70710677, %v708_v7  ;;  %v869_v23 = vadd.f32 %v866_v1, %v708_v7  ;;  %v964_v40 = vmul.f32 -0.35355338, %v4102_v6 }
  0xf7   : > { %v2981_v13 = vpop.f32.mrb[8].mxu1  ;;  %v717_v20 = vpop.f32.mrb[9].mxu0  ;;  %v4116_v22 = vadd.f32 %v858_v9, %v855_v63  ;;  %v978_v24 = vmul.f32 -0.5, %v4107_v10  ;;  %v4120_v31 = vadd.f32 %v2957_v11, %v4047_v12 }
  0xf8   : > { %v797_v25 = vpop.f32.mrb[9].mxu1  ;;  %v860_v30 = vadd.f32 %v857_v18, %v854_v32  ;;  %v4123_v35 = vadd.f32 %v2981_v13, %v4047_v12  ;;  %v718_v39 = vadd.f32 %v4047_v12, %v717_v20  ;;  %v4128_v48 = vadd.f32 %v979_v17, %v976_v21 }
  0xf9   : > { %v798_v44 = vadd.f32 %v4047_v12, %v797_v25  ;;  %v4130_v50 = vadd.f32 %v978_v24, %v975_v52  ;;  %v839_v32 = vmul.f32 -0.33333334, %v4120_v31  ;;  %v4135_v51 = vadd.f32 %v4059_v29, %v4120_v31 }
  0xfa   : > { %v2960_v45 = vpop.f32.mrb[10].mxu0  ;;  %v950_v54 = vmul.f32 -0.28867513, %v4120_v31  ;;  %v4139_v56 = vmul.f32 -0.28867513, %v4123_v35  ;;  %v4144_v60 = vadd.f32 %v868_v3, %v718_v39 }
  0xfb   : > { %v2984_v46 = vpop.f32.mrb[10].mxu1  ;;  %v4142_v57 = vmul.f32 -0.35355338, %v4123_v35  ;;  %v859_v59 = vmul.f32 -0.70710677, %v718_v39  ;;  %v842_v63 = vadd.f32 %v839_v32, %v4077_v42  ;;  %v4151_v29 = vadd.f32 %v2960_v45, %v4047_v12  ;;  %v727_v1 = vpop.f32.mrb[11].mxu0 }
  0xfc   : > { %v4146_v62 = vmul.f32 -0.28867513, %v798_v44  ;;  %v953_v52 = vadd.f32 %v950_v54, %v4068_v37  ;;  %v926_v0 = vmul.f32 -0.35355338, %v798_v44  ;;  %v807_v2 = vpop.f32.mrb[11].mxu1  ;;  %v813_v7 = vadd.f32 %v2984_v46, %v4047_v12 }
  0xfd   : > { %v862_v5 = vadd.f32 %v859_v59, %v856_v55  ;;  %v728_v9 = vadd.f32 %v4047_v12, %v727_v1  ;;  %v808_v3 = vadd.f32 %v4047_v12, %v807_v2  ;;  %v841_v42 = vmul.f32 -0.33333334, %v4151_v29 }
  0xfe   : > { %v2963_v11 = vpop.f32.mrb[12].mxu0  ;;  %v848_v17 = vadd.f32 %v4146_v62, %v842_v63  ;;  %v959_v37 = vadd.f32 %v4089_v53, %v953_v52  ;;  %v4161_v18 = vadd.f32 %v4079_v43, %v4151_v29  ;;  %v952_v21 = vmul.f32 -0.28867513, %v4151_v29 }
  0xff   : > { %v2987_v13 = vpop.f32.mrb[12].mxu1  ;;  %v737_v20 = vpop.f32.mrb[13].mxu0  ;;  %v929_v24 = vadd.f32 %v926_v0, %v4066_v34  ;;  %v932_v25 = vmul.f32 -0.5, %v813_v7  ;;  %v938_v39 = vadd.f32 %v926_v0, %v4084_v49  ;;  %v4166_v32 = vadd.f32 %v980_v14, %v813_v7 }
 0x100   : > { %v817_v55 = vpop.f32.mrb[13].mxu1  ;;  %v863_v45 = vmax.f32 %v848_v17, %v860_v30  ;;  %v965_v46 = vadd.f32 %v962_v8, %v959_v37  ;;  %v840_v53 = vmul.f32 -0.33333334, %v728_v9  ;;  %v955_v54 = vadd.f32 %v952_v21, %v4081_v47 }
 0x101   : > { %v935_v59 = vadd.f32 %v932_v25, %v929_v24  ;;  %v941_v52 = vadd.f32 %v938_v39, %v932_v25  ;;  %v885_v43 = vadd.f32 %v4055_v27, %v728_v9  ;;  %v951_v36 = vmul.f32 -0.28867513, %v728_v9 }
 0x102   : > { %v2966_v63 = vpop.f32.mrb[14].mxu0  ;;  %v4170_v1 = vmax.f32 %v863_v45, %v869_v23  ;;  %v968_v2 = vadd.f32 %v965_v46, %v798_v44  ;;  %v843_v34 = vadd.f32 %v840_v53, %v4099_v4  ;;  %v844_v8 = vadd.f32 %v841_v42, %v4092_v58 }
 0x103   : > { %v747_v26 = vpop.f32.mrb[15].mxu0  ;;  %v944_v49 = vmax.f32 %v935_v59, %v941_v52  ;;  %v4174_v14 = vmul.f32 -0.28867513, %v808_v3  ;;  %v928_v30 = vmul.f32 -0.35355338, %v808_v3  ;;  %v954_v0 = vadd.f32 %v951_v36, %v4057_v28 }
 0x104   : > { %v4177_v47 = vadd.f32 %v4139_v56, %v843_v34  ;;  %v961_v27 = vadd.f32 %v4110_v15, %v955_v54  ;;  %v743_v23 = vadd.f32 %v2963_v11, %v4047_v12  ;;  %v897_v7 = vmul.f32 -0.4082483, %v728_v9 }
 0x105   : > { %v4182_v44 = vmax.f32 %v944_v49, %v968_v2  ;;  %v850_v4 = vadd.f32 %v4174_v14, %v844_v8  ;;  %v823_v17 = vadd.f32 %v2987_v13, %v4047_v12  ;;  %v931_v21 = vadd.f32 %v928_v30, %v4096_v61 }
 0x106   : > { %v967_v58 = vadd.f32 %v964_v40, %v961_v27  ;;  %v888_v37 = vmul.f32 -0.4082483, %v743_v23  ;;  %v912_v42 = vmul.f32 -0.70710677, %v743_v23  ;;  %v900_v28 = vadd.f32 %v897_v7, %v743_v23  ;;  %v2565_v23 = vld [vmem:[%s5125_s3] ss:$0 sm:$0xff] }
 0x107   : > { %v986_v24 = vmax.f32 %v4182_v44, %v4166_v32  ;;  %v865_v36 = vmax.f32 %v850_v4, %v862_v5  ;;  %v934_v15 = vmul.f32 -0.5, %v823_v17  ;;  %v940_v45 = vadd.f32 %v928_v30, %v4102_v6 }
 0x108   : > { %v970_v25 = vadd.f32 %v967_v58, %v808_v3  ;;  %v891_v11 = vadd.f32 %v888_v37, %v885_v43  ;;  %v915_v39 = vadd.f32 %v912_v42, %v4052_v19  ;;  %v957_v9 = vmul.f32 -0.35355338, %v4063_v33 }
 0x109   : > { %v874_v40 = vmax.f32 %v865_v36, %v4144_v60  ;;  %v906_v13 = vadd.f32 %v4071_v38, %v900_v28  ;;  %v937_v46 = vadd.f32 %v934_v15, %v931_v21  ;;  %v943_v53 = vadd.f32 %v940_v45, %v934_v15 }
 0x10a   : > { %v894_v61 = vadd.f32 %v891_v11, %v4139_v56  ;;  %v4196_v5 = vadd.f32 %v4128_v48, %v823_v17  ;;  %v738_v3 = vadd.f32 %v4047_v12, %v737_v20  ;;  %v963_v54 = vmul.f32 -0.35355338, %v4107_v10 }
 0x10b   : > { %v896_v19 = vmul.f32 -0.4082483, %v4120_v31  ;;  %v818_v6 = vadd.f32 %v4047_v12, %v817_v55  ;;  %v930_v60 = vadd.f32 %v4142_v57, %v4063_v33  ;;  %v946_v38 = vmax.f32 %v937_v46, %v943_v53  ;;  %v2581_v53 = vld [vmem:[%s5126_s4 + $0xf8] sm:$0xff] }
 0x10c   : > { %v909_v59 = vmax.f32 %v894_v61, %v906_v13  ;;  %v887_v52 = vmul.f32 -0.4082483, %v738_v3  ;;  %v939_v56 = vadd.f32 %v4142_v57, %v4107_v10  ;;  %v960_v2 = vadd.f32 %v957_v9, %v954_v0  ;;  %v1076_v13 = vld [vmem:[%s5126_s4 + $0x70] sm:$0xff] }
 0x10d   : > { %v899_v43 = vadd.f32 %v896_v19, %v738_v3  ;;  %v933_v48 = vmul.f32 -0.5, %v818_v6  ;;  %v984_v20 = vadd.f32 %v4130_v50, %v818_v6  ;;  %v973_v49 = vmax.f32 %v946_v38, %v970_v25  ;;  %v2580_v61 = vld [vmem:[%s5126_s4 + $0xf0] sm:$0xff] }
 0x10e   : > { %v918_v34 = vmax.f32 %v909_v59, %v915_v39  ;;  %v890_v31 = vadd.f32 %v887_v52, %v4135_v51  ;;  %v753_v55 = vadd.f32 %v2966_v63, %v4047_v12  ;;  %v966_v33 = vadd.f32 %v963_v54, %v960_v2 }
 0x10f   : > { %v936_v8 = vadd.f32 %v933_v48, %v930_v60  ;;  %v942_v30 = vadd.f32 %v939_v56, %v933_v48  ;;  %v911_v27 = vmul.f32 -0.70710677, %v738_v3  ;;  %v988_v10 = vmax.f32 %v973_v49, %v4196_v5 }
 0x110   : > { %v893_v57 = vadd.f32 %v890_v31, %v4146_v62  ;;  %v902_v0 = vmul.f32 -0.70710677, %v753_v55  ;;  %v748_v50 = vadd.f32 %v4047_v12, %v747_v26  ;;  %v969_v51 = vadd.f32 %v966_v33, %v4123_v35 }
 0x111   : > { %v945_v4 = vmax.f32 %v936_v8, %v942_v30  ;;  %v914_v7 = vadd.f32 %v911_v27, %v753_v55  ;;  %v898_v63 = vmul.f32 -0.4082483, %v4151_v29  ;;  %v904_v17 = vmul.f32 -0.70710677, %v4075_v41 }
 0x112   : > { %v905_v58 = vadd.f32 %v902_v0, %v899_v43  ;;  %v889_v37 = vmul.f32 -0.4082483, %v748_v50  ;;  %v913_v42 = vmul.f32 -0.70710677, %v748_v50  ;;  %v864_v28 = vmax.f32 %v4177_v47, %v4116_v22 }
 0x113   : > { %v972_v21 = vmax.f32 %v945_v4, %v969_v51  ;;  %v901_v36 = vadd.f32 %v898_v63, %v748_v50  ;;  %v4221_v62 = vadd.f32 %v2565_v23, %v4170_v1  ;;  %v5139_v15 = vlaneseq }
 0x114   : > { %v908_v12 = vmax.f32 %v893_v57, %v905_v58  ;;  %v892_v26 = vadd.f32 %v889_v37, %v4161_v18  ;;  %v916_v35 = vadd.f32 %v913_v42, %v4075_v41  ;;  %v873_v39 = vmax.f32 %v864_v28, %v4112_v16  ;;  %v1077_v16 = vld [vmem:[%s5126_s4 + $0x78] sm:$0xff]  ;;  %v2582_v42 = vld [vmem:[%s5126_s4 + $0x100] sm:$0xff] }
 0x115   : > { %v4226_v29 = vshrl.u32 %v5139_v15, 7  ;;  %v987_v25 = vmax.f32 %v972_v21, %v984_v20  ;;  %v907_v11 = vadd.f32 %v904_v17, %v901_v36  ;;  %v4229_v45 = vadd.f32 %v2565_v23, %v874_v40  ;;  %v2583_v21 = vld [vmem:[%s5126_s4 + $0x108] sm:$0xff] }
 0x116   : > { %v917_v9 = vmax.f32 %v908_v12, %v914_v7  ;;  %v895_v22 = vadd.f32 %v892_v26, %v4174_v14  ;;  %v4232_v47 = vadd.f32 %v2565_v23, %v918_v34  ;;  %v4234_v1 = vadd.f32 %v2565_v23, %v873_v39  ;;  %v2585_v39 = vld [vmem:[%s5126_s4 + $0x118] sm:$0xff] }
 0x117   : > { %v878_v18 = vmax.f32 %v4221_v62, 0.0  ;;  %v880_v41 = vmax.f32 %v4229_v45, 0.0  ;;  %v4256_v5 = vadd.f32 %v2565_v23, %v986_v24  ;;  %vm1006_vm4 = vcmp.lt.s32.totalorder %v4226_v29, 7 }
 0x118   : > { %v4244_v40 = vadd.f32 %v2565_v23, %v917_v9  ;;  %v910_v46 = vmax.f32 %v895_v22, %v907_v11  ;;  %v924_v14 = vmax.f32 %v4232_v47, 0.0  ;;  %v879_v3 = vmax.f32 %v4234_v1, 0.0  ;;  %v2584_v11 = vld [vmem:[%s5126_s4 + $0x110] sm:$0xff] }
 0x119   : > { %v997_v54 = vrot.slane %v880_v41, 1  ;;  %v4262_v19 = vadd.f32 %v2565_v23, %v987_v25  ;;  %v3529_v59 = vpack.c.bf16 %v1077_v16, %v1076_v13  ;;  %v995_v38 = vrot.slane %v878_v18, 1  ;;  %v2587_v13 = vld [vmem:[%s5126_s4 + $0x128] sm:$0xff]  ;;  %v2588_v47 = vld [vmem:[%s5126_s4 + $0x130] sm:$0xff] }
 0x11a   : > { %v919_v6 = vmax.f32 %v910_v46, %v916_v35  ;;  %v923_v60 = vmax.f32 %v4244_v40, 0.0  ;;  %v996_v52 = vrot.slane %v879_v3, 1  ;;  %v999_v32 = vrot.slane %v924_v14, 1 }
 0x11b   : > { %v3505_v44 = vpack.c.bf16 %v2581_v53, %v2580_v61  ;;  %3530 = vmatpush3.bf16.msra.mxu0 %v3529_v59  ;;  %v4273_v43 = vadd.f32 %v2565_v23, %v988_v10  ;;  %v993_v20 = vmax.f32 %v4262_v19, 0.0  ;;  %v3785_v55 = vmov 0.0   ;;  %v2594_v19 = vld [vmem:[%s5126_s4 + $0x160] sm:$0xff] }
 0x11c   : > { %v998_v24 = vrot.slane %v923_v60, 1  ;;  %v4271_v56 = vadd.f32 %v2565_v23, %v919_v6  ;;  %v1013_v48 = vsel %vm1006_vm4, %v996_v52, %v997_v54  ;;  %v1014_v2 = vsel %vm1006_vm4, %v995_v38, %v996_v52  ;;  %3079 = vmatprep.mubr.msk.f32.mxu0 %vm3784_vm5, %v3785_v55  ;;  %3020 = vmatprep.mubr.msk.f32.mxu1 %vm3784_vm5, %v3785_v55  ;;  %v2591_v52 = vld [vmem:[%s5126_s4 + $0x148] sm:$0xff] }
 0x11d   : > { %3506 = vmatpush3.bf16.msra.mxu1 %v3505_v44  ;;  %v3759_v34 = vpack.i.bf16 %v1013_v48, %v1014_v2  ;;  %v5140_v8 = vmov 0.0|0.0   ;;  %v992_v30 = vmax.f32 %v4256_v5, 0.0  ;;  %v994_v23 = vmax.f32 %v4273_v43, 0.0  ;;  %v2592_v5 = vld [vmem:[%s5126_s4 + $0x150] sm:$0xff]  ;;  %v2593_v2 = vld [vmem:[%s5126_s4 + $0x158] sm:$0xff] }
 0x11e   : > { %v1011_v49 = vsel %vm1006_vm4, %v998_v24, %v999_v32  ;;  %v925_v31 = vmax.f32 %v4271_v56, 0.0  ;;  %3531 = vmatprep.subr.bf16.mxu1 %v5140_v8  ;;  %3555 = vmatprep.subr.bf16.mxu0 %v5140_v8  ;;  %v1012_v27 = vsel %vm1006_vm4, %v997_v54, %v998_v24  ;;  %v1002_v57 = vrot.slane %v993_v20, 1  ;;  %v2596_v43 = vld [vmem:[%s5126_s4 + $0x170] sm:$0xff] }
 0x11f   : > { %1031 = vrot.lane.b32.xlu1 %v1011_v49, %s3786_s21  ;;  %3760 = vrot.lane.b32.xlu0 %v3759_v34, %s3786_s21  ;;  %v1001_v0 = vrot.slane %v992_v30, 1  ;;  %v1003_v4 = vrot.slane %v994_v23, 1  ;;  %vm1087_vm7 = vcmp.lt.s32.totalorder %v4226_v29, 6  ;;  %v3532_v62 = vpack.c.bf16 %v2583_v21, %v2582_v42 }
 0x120   : > { %v1000_v33 = vrot.slane %v925_v31, 1  ;;  %vm1343_vm8 = vcmp.lt.s32.totalorder %v4226_v29, 4  ;;  %vm2219_vm9 = vcmp.lt.s32.totalorder %v4226_v29, 2  ;;  %v2338_v29 = vld [vmem:[%s5133_s11 + $0x10] sm:$0xff] }
 0x121   : > { %v1008_v50 = vsel %vm1006_vm4, %v1001_v0, %v1002_v57  ;;  %v1015_v7 = vsel %vm1006_vm4, %v1003_v4, %v995_v38  ;;  %v1007_v63 = vsel %vm1006_vm4, %v1002_v57, %v1003_v4  ;;  %v2590_v38 = vld [vmem:[%s5126_s4 + $0x140] sm:$0xff] }
 0x122   : > { %v1010_v10 = vsel %vm1006_vm4, %v999_v32, %v1000_v33  ;;  %v1009_v51 = vsel %vm1006_vm4, %v1000_v33, %v1001_v0  ;;  %v3544_v48 = vpack.c.bf16 %v2591_v52, %v2590_v38  ;;  %v3547_v33 = vpack.c.bf16 %v2593_v2, %v2592_v5  ;;  %v2608_v2 = vld [vmem:[%s5129_s7 + $0xc0] sm:$0xff] }
 0x123   : > { %1033 = vrot.lane.b32.xlu1 %v1010_v10, %s3786_s21  ;;  %1029 = vrot.lane.b32.xlu0 %v1012_v27, %s3786_s21 }
 0x127   : > { %1037 = vrot.lane.b32.xlu1 %v1008_v50, %s3786_s21  ;;  %1035 = vrot.lane.b32.xlu0 %v1009_v51, %s3786_s21 }
 0x12b   : > { %1041 = vrot.lane.b32.xlu1 %v1015_v7, %s3786_s21  ;;  %1039 = vrot.lane.b32.xlu0 %v1007_v63, %s3786_s21 }
 0x191   : > { %v3761_v17 = vpop.permute.xlu0 %3760  ;;  %v1032_v28 = vpop.permute.xlu1 %1031 }
 0x192   : > { %v3763_v58 = vunpack.i.h.bf16 %v3761_v17  ;;  %v3762_v37 = vunpack.i.l.bf16 %v3761_v17  ;;  %v4358_v22 = vsel %vm1052_vm6, %v923_v60, %v1032_v28 }
 0x193   : > { %v1081_v16 = vrot.slane %v4358_v22, 2  ;;  %v1337_v21 = vrot.slane %v4358_v22, 4 }
 0x194   : > { %v4326_v36 = vsel %vm1052_vm6, %v879_v3, %v3763_v58  ;;  %v4331_v12 = vsel %vm1052_vm6, %v878_v18, %v3762_v37  ;;  %v3535_v18 = vpack.c.bf16 %v2585_v39, %v2584_v11 }
 0x195   : > { %v1079_v26 = vrot.slane %v4326_v36, 2  ;;  %v1030_v35 = vpop.permute.xlu0 %1029  ;;  %v1078_v15 = vrot.slane %v4331_v12, 2  ;;  %3080 = vmatmul.mubr.f32.vlgmr.msra.gmra.mrb[16].mxu0 %v4331_v12  ;;  %v1034_v1 = vpop.permute.xlu1 %1033  ;;  %v1335_v63 = vrot.slane %v4326_v36, 4  ;;  %v1334_v17 = vrot.slane %v4331_v12, 4 }
 0x196   : > { %v4340_v25 = vsel %vm1052_vm6, %v880_v41, %v1030_v35  ;;  %3082 = vmatprep.mubr.msk.f32.mxu0 %vm3784_vm5, %v3785_v55  ;;  %v2586_v41 = vld [vmem:[%s5126_s4 + $0x120] sm:$0xff]  ;;  %v4378_v46 = vsel %vm1052_vm6, %v924_v14, %v1034_v1  ;;  %v2589_v14 = vld [vmem:[%s5126_s4 + $0x138] sm:$0xff] }
 0x197   : > { %v1080_v9 = vrot.slane %v4340_v25, 2  ;;  %v1095_v45 = vsel %vm1087_vm7, %v1078_v15, %v1079_v26  ;;  %v3538_v53 = vpack.c.bf16 %v2587_v13, %v2586_v41  ;;  %v1082_v3 = vrot.slane %v4378_v46, 2  ;;  %v2600_v1 = vld [vmem:[%s5129_s7 + $0x80] sm:$0xff] }
 0x198   : > { %3021 = vmatmul.mubr.f32.vlgmr.msra.gmra.mrb[14].mxu1 %v1095_v45  ;;  %v3541_v59 = vpack.c.bf16 %v2589_v14, %v2588_v47  ;;  %v1336_v37 = vrot.slane %v4340_v25, 4  ;;  %v1351_v42 = vsel %vm1343_vm8, %v1334_v17, %v1335_v63  ;;  %v1338_v28 = vrot.slane %v4378_v46, 4  ;;  %v1572_v41 = vld [vmem:[%s5129_s7] sm:$0xff]  ;;  %v1575_v47 = vld [vmem:[%s5129_s7 + $0x18] sm:$0xff] }
 0x199   : > { %3083 = vmatmul.mubr.f32.gmra.mrb[18].mxu0 %v4326_v36  ;;  %3533 = vmatpush3.bf16.msra.mxu1 %v3532_v62  ;;  %v1094_v40 = vsel %vm1087_vm7, %v1079_v26, %v1080_v9  ;;  %v1036_v61 = vpop.permute.xlu0 %1035  ;;  %v1093_v54 = vsel %vm1087_vm7, %v1080_v9, %v1081_v16  ;;  %v1038_v60 = vpop.permute.xlu1 %1037  ;;  %v1092_v44 = vsel %vm1087_vm7, %v1081_v16, %v1082_v3  ;;  %v1573_v16 = vld [vmem:[%s5129_s7 + $0x8] sm:$0xff] }
 0x19a   : > { %3023 = vmatprep.mubr.msk.f32.mxu1 %vm3784_vm5, %v3785_v55  ;;  %3085 = vmatprep.mubr.msk.f32.mxu0 %vm3784_vm5, %v3785_v55  ;;  %v4398_v6 = vsel %vm1052_vm6, %v925_v31, %v1036_v61  ;;  %v4418_v24 = vsel %vm1052_vm6, %v992_v30, %v1038_v60  ;;  %v1350_v36 = vsel %vm1343_vm8, %v1335_v63, %v1336_v37  ;;  %v1576_v60 = vld [vmem:[%s5129_s7 + $0x20] sm:$0xff] }
 0x19b   : > { %3534 = vmatprep.subr.bf16.mxu1 %v5140_v8  ;;  %v1083_v32 = vrot.slane %v4398_v6, 2  ;;  %v1084_v34 = vrot.slane %v4418_v24, 2  ;;  %v1349_v12 = vsel %vm1343_vm8, %v1336_v37, %v1337_v21  ;;  %v1339_v26 = vrot.slane %v4398_v6, 4 }
 0x19c   : > { %3024 = vmatmul.mubr.f32.gmra.mrb[16].mxu1 %v1094_v40  ;;  %v1348_v35 = vsel %vm1343_vm8, %v1337_v21, %v1338_v28  ;;  %v2602_v40 = vld [vmem:[%s5129_s7 + $0x90] sm:$0xff]  ;;  %v3580_v61 = vpack.c.bf16 %v1573_v16, %v1572_v41 }
 0x19d   : > { %3086 = vmatmul.mubr.f32.gmra.mrb[20].mxu0 %v4340_v25  ;;  %3536 = vmatpush3.bf16.msra.mxu1 %v3535_v18  ;;  %v1040_v56 = vpop.permute.xlu0 %1039  ;;  %v1091_v49 = vsel %vm1087_vm7, %v1082_v3, %v1083_v32  ;;  %v1042_v30 = vpop.permute.xlu1 %1041  ;;  %v1090_v10 = vsel %vm1087_vm7, %v1083_v32, %v1084_v34  ;;  %v1347_v25 = vsel %vm1343_vm8, %v1338_v28, %v1339_v26  ;;  %v2601_v18 = vld [vmem:[%s5129_s7 + $0x88] sm:$0xff]  ;;  %v2606_v32 = vld [vmem:[%s5129_s7 + $0xb0] sm:$0xff] }
 0x19e   : > { %3026 = vmatprep.mubr.msk.f32.mxu1 %vm3784_vm5, %v3785_v55  ;;  %3088 = vmatprep.mubr.msk.f32.mxu0 %vm3784_vm5, %v3785_v55  ;;  %v4438_v31 = vsel %vm1052_vm6, %v993_v20, %v1040_v56  ;;  %v2595_v20 = vld [vmem:[%s5126_s4 + $0x168] sm:$0xff]  ;;  %v4458_v57 = vsel %vm1052_vm6, %v994_v23, %v1042_v30  ;;  %v2597_v23 = vld [vmem:[%s5126_s4 + $0x178] sm:$0xff]  ;;  %v3556_v13 = vpack.c.bf16 %v2601_v18, %v2600_v1 }
 0x19f   : > { %3537 = vmatprep.subr.bf16.mxu1 %v5140_v8  ;;  %v1085_v27 = vrot.slane %v4438_v31, 2  ;;  %v3550_v0 = vpack.c.bf16 %v2595_v20, %v2594_v19  ;;  %v1086_v50 = vrot.slane %v4458_v57, 2  ;;  %v3553_v51 = vpack.c.bf16 %v2597_v23, %v2596_v43  ;;  %v1579_v56 = vld [vmem:[%s5129_s7 + $0x38] sm:$0xff]  ;;  %v2610_v19 = vld [vmem:[%s5129_s7 + $0xd0] sm:$0xff]  ;;  %v2612_v43 = vld [vmem:[%s5129_s7 + $0xe0] sm:$0xff] }
 0x1a0   : > { %3027 = vmatmul.mubr.f32.gmra.mrb[18].mxu1 %v1093_v54  ;;  %v1341_v62 = vrot.slane %v4438_v31, 4  ;;  %v1342_v39 = vrot.slane %v4458_v57, 4  ;;  %3557 = vmatpush3.bf16.msra.mxu0 %v3556_v13  ;;  %v2604_v54 = vld [vmem:[%s5129_s7 + $0xa0] sm:$0xff]  ;;  %v2611_v20 = vld [vmem:[%s5129_s7 + $0xd8] sm:$0xff]  ;;  %v2613_v23 = vld [vmem:[%s5129_s7 + $0xe8] sm:$0xff] }
 0x1a1   : > { %3089 = vmatmul.mubr.f32.gmra.mrb[22].mxu0 %v4358_v22  ;;  %3539 = vmatpush3.bf16.msra.mxu1 %v3538_v53  ;;  %v1089_v4 = vsel %vm1087_vm7, %v1084_v34, %v1085_v27  ;;  %v1088_v7 = vsel %vm1087_vm7, %v1085_v27, %v1086_v50  ;;  %v1096_v58 = vsel %vm1087_vm7, %v1086_v50, %v1078_v15  ;;  %v1340_v15 = vrot.slane %v4418_v24, 4  ;;  %v1574_v53 = vld [vmem:[%s5129_s7 + $0x10] sm:$0xff]  ;;  %v2609_v34 = vld [vmem:[%s5129_s7 + $0xc8] sm:$0xff]  ;;  %v1584_v50 = vld [vmem:[%s5129_s7 + $0x60] sm:$0xff] }
 0x1a2   : > { %3029 = vmatprep.mubr.msk.f32.mxu1 %vm3784_vm5, %v3785_v55  ;;  %3091 = vmatprep.mubr.msk.f32.mxu0 %vm3784_vm5, %v3785_v55  ;;  %v1344_v45 = vsel %vm1343_vm8, %v1341_v62, %v1342_v39  ;;  %v1352_v22 = vsel %vm1343_vm8, %v1342_v39, %v1334_v17  ;;  %v3583_v3 = vpack.c.bf16 %v1575_v47, %v1574_v53  ;;  %v1582_v27 = vld [vmem:[%s5129_s7 + $0x50] sm:$0xff] }
 0x1a3   : > { %3540 = vmatprep.subr.bf16.mxu1 %v5140_v8  ;;  %v1346_v11 = vsel %vm1343_vm8, %v1339_v26, %v1340_v15  ;;  %v1345_v9 = vsel %vm1343_vm8, %v1340_v15, %v1341_v62  ;;  %3558 = vmatprep.subr.bf16.mxu0 %v5140_v8  ;;  %v3568_v30 = vpack.c.bf16 %v2609_v34, %v2608_v2 }
 0x1a4   : > { %3030 = vmatmul.mubr.f32.gmra.mrb[20].mxu1 %v1092_v44  ;;  %v2607_v44 = vld [vmem:[%s5129_s7 + $0xb8] sm:$0xff] }
 0x1a5   : > { %3092 = vmatmul.mubr.f32.gmra.mrb[24].mxu0 %v4378_v46  ;;  %3542 = vmatpush3.bf16.msra.mxu1 %v3541_v59  ;;  %v2603_v46 = vld [vmem:[%s5129_s7 + $0x98] sm:$0xff]  ;;  %v1577_v59 = vld [vmem:[%s5129_s7 + $0x28] sm:$0xff] }
 0x1a6   : > { %3032 = vmatprep.mubr.msk.f32.mxu1 %vm3784_vm5, %v3785_v55  ;;  %3094 = vmatprep.mubr.msk.f32.mxu0 %vm3784_vm5, %v3785_v55  ;;  %v3559_v14 = vpack.c.bf16 %v2603_v46, %v2602_v40  ;;  %v3586_v52 = vpack.c.bf16 %v1577_v59, %v1576_v60 }
 0x1a7   : > { %3543 = vmatprep.subr.bf16.mxu1 %v5140_v8 }
 0x1a8   : > { %3033 = vmatmul.mubr.f32.gmra.mrb[22].mxu1 %v1091_v49  ;;  %3560 = vmatpush3.bf16.msra.mxu0 %v3559_v14  ;;  %v1580_v49 = vld [vmem:[%s5129_s7 + $0x40] sm:$0xff] }
 0x1a9   : > { %3095 = vmatmul.mubr.f32.gmra.mrb[26].mxu0 %v4398_v6  ;;  %3545 = vmatpush3.bf16.msra.mxu1 %v3544_v48  ;;  %v2605_v6 = vld [vmem:[%s5129_s7 + $0xa8] sm:$0xff]  ;;  %v3565_v48 = vpack.c.bf16 %v2607_v44, %v2606_v32 }
 0x1aa   : > { %3035 = vmatprep.mubr.msk.f32.mxu1 %vm3784_vm5, %v3785_v55  ;;  %3097 = vmatprep.mubr.msk.f32.mxu0 %vm3784_vm5, %v3785_v55  ;;  %v3562_v38 = vpack.c.bf16 %v2605_v6, %v2604_v54 }
 0x1ab   : > { %3546 = vmatprep.subr.bf16.mxu1 %v5140_v8  ;;  %3561 = vmatprep.subr.bf16.mxu0 %v5140_v8 }
 0x1ac   : > { %3036 = vmatmul.mubr.f32.gmra.mrb[24].mxu1 %v1090_v10  ;;  %3563 = vmatpush3.bf16.msra.mxu0 %v3562_v38  ;;  %v1583_v10 = vld [vmem:[%s5129_s7 + $0x58] sm:$0xff] }
 0x1ad   : > { %3098 = vmatmul.mubr.f32.gmra.mrb[28].mxu0 %v4418_v24  ;;  %3038 = vmatprep.mubr.msk.f32.mxu1 %vm3784_vm5, %v3785_v55  ;;  %v1578_v24 = vld [vmem:[%s5129_s7 + $0x30] sm:$0xff] }
 0x1ae   : > { %3548 = vmatpush3.bf16.msra.mxu1 %v3547_v33  ;;  %3100 = vmatprep.mubr.msk.f32.mxu0 %vm3784_vm5, %v3785_v55  ;;  %v3589_v5 = vpack.c.bf16 %v1579_v56, %v1578_v24 }
 0x1af   : > { %3549 = vmatprep.subr.bf16.mxu1 %v5140_v8  ;;  %3564 = vmatprep.subr.bf16.mxu0 %v5140_v8 }
 0x1b0   : > { %3039 = vmatmul.mubr.f32.gmra.mrb[26].mxu1 %v1089_v4  ;;  %3566 = vmatpush3.bf16.msra.mxu0 %v3565_v48  ;;  %v1585_v4 = vld [vmem:[%s5129_s7 + $0x68] sm:$0xff] }
 0x1b1   : > { %3101 = vmatmul.mubr.f32.gmra.mrb[30].mxu0 %v4438_v31  ;;  %3041 = vmatprep.mubr.msk.f32.mxu1 %vm3784_vm5, %v3785_v55  ;;  %v1581_v31 = vld [vmem:[%s5129_s7 + $0x48] sm:$0xff] }
 0x1b2   : > { %3551 = vmatpush3.bf16.msra.mxu1 %v3550_v0  ;;  %3103 = vmatprep.mubr.msk.f32.mxu0 %vm3784_vm5, %v3785_v55  ;;  %v3592_v33 = vpack.c.bf16 %v1581_v31, %v1580_v49  ;;  %v3595_v0 = vpack.c.bf16 %v1583_v10, %v1582_v27  ;;  %v2598_v27 = vld [vmem:[%s5127_s5] ss:$0 sm:$0xff] }
 0x1b3   : > { %3552 = vmatprep.subr.bf16.mxu1 %v5140_v8  ;;  %3567 = vmatprep.subr.bf16.mxu0 %v5140_v8 }
 0x1b4   : > { %3042 = vmatmul.mubr.f32.gmra.mrb[28].mxu1 %v1088_v7  ;;  %3569 = vmatpush3.bf16.msra.mxu0 %v3568_v30  ;;  %v3598_v7 = vpack.c.bf16 %v1585_v4, %v1584_v50 }
 0x1b5   : > { %3104 = vmatmul.mubr.f32.gmra.mrb[32].mxu0 %v4458_v57  ;;  %3044 = vmatprep.mubr.msk.f32.mxu1 %vm3784_vm5, %v3785_v55  ;;  %v3571_v57 = vpack.c.bf16 %v2611_v20, %v2610_v19 }
 0x1b6   : > { %3554 = vmatpush3.bf16.msra.mxu1 %v3553_v51  ;;  %3197 = vmatprep.mubr.msk.f32.mxu0 %vm3784_vm5, %v3785_v55  ;;  %v3574_v51 = vpack.c.bf16 %v2613_v23, %v2612_v43 }
 0x1b7   : > { %3579 = vmatprep.subr.bf16.mxu1 %v5140_v8  ;;  %3570 = vmatprep.subr.bf16.mxu0 %v5140_v8 }
 0x1b8   : > { %3045 = vmatmul.mubr.f32.gmra.mrb[30].mxu1 %v1096_v58  ;;  %3572 = vmatpush3.bf16.msra.mxu0 %v3571_v57 }
 0x1b9   : > { %3138 = vmatprep.mubr.msk.f32.mxu1 %vm3784_vm5, %v3785_v55  ;;  %3573 = vmatprep.subr.bf16.mxu0 %v5140_v8 }
 0x1bc   : > { %3139 = vmatmul.mubr.f32.vlgmr.msra.gmra.mrb[32].mxu1 %v1351_v42  ;;  %3575 = vmatpush3.bf16.msra.mxu0 %v3574_v51 }
 0x1bd   : > { %3141 = vmatprep.mubr.msk.f32.mxu1 %vm3784_vm5, %v3785_v55  ;;  %3581 = vmatpush3.bf16.msra.mxu1 %v3580_v61 }
 0x1be   : > { %3582 = vmatprep.subr.bf16.mxu1 %v5140_v8  ;;  %3576 = vmatprep.subr.bf16.mxu0 %v5140_v8 }
 0x1c0   : > { %3142 = vmatmul.mubr.f32.gmra.mrb[34].mxu1 %v1350_v36 }
 0x1c1   : > { %3144 = vmatprep.mubr.msk.f32.mxu1 %vm3784_vm5, %v3785_v55  ;;  %3584 = vmatpush3.bf16.msra.mxu1 %v3583_v3 }
 0x1c2   : > { %3585 = vmatprep.subr.bf16.mxu1 %v5140_v8 }
 0x1c4   : > { %3145 = vmatmul.mubr.f32.gmra.mrb[36].mxu1 %v1349_v12 }
 0x1c5   : > { %3147 = vmatprep.mubr.msk.f32.mxu1 %vm3784_vm5, %v3785_v55  ;;  %3587 = vmatpush3.bf16.msra.mxu1 %v3586_v52 }
 0x1c6   : > { %3588 = vmatprep.subr.bf16.mxu1 %v5140_v8 }
 0x1c8   : > { %3148 = vmatmul.mubr.f32.gmra.mrb[38].mxu1 %v1348_v35 }
 0x1c9   : > { %3150 = vmatprep.mubr.msk.f32.mxu1 %vm3784_vm5, %v3785_v55  ;;  %3590 = vmatpush3.bf16.msra.mxu1 %v3589_v5 }
 0x1ca   : > { %3591 = vmatprep.subr.bf16.mxu1 %v5140_v8 }
 0x1cc   : > { %3151 = vmatmul.mubr.f32.gmra.mrb[40].mxu1 %v1347_v25 }
 0x1cd   : > { %3153 = vmatprep.mubr.msk.f32.mxu1 %vm3784_vm5, %v3785_v55  ;;  %3593 = vmatpush3.bf16.msra.mxu1 %v3592_v33 }
 0x1ce   : > { %3594 = vmatprep.subr.bf16.mxu1 %v5140_v8 }
 0x1d0   : > { %3154 = vmatmul.mubr.f32.gmra.mrb[42].mxu1 %v1346_v11 }
 0x1d1   : > { %3156 = vmatprep.mubr.msk.f32.mxu1 %vm3784_vm5, %v3785_v55  ;;  %3596 = vmatpush3.bf16.msra.mxu1 %v3595_v0 }
 0x1d2   : > { %3597 = vmatprep.subr.bf16.mxu1 %v5140_v8 }
 0x1d4   : > { %3157 = vmatmul.mubr.f32.gmra.mrb[44].mxu1 %v1345_v9 }
 0x1d5   : > { %3159 = vmatprep.mubr.msk.f32.mxu1 %vm3784_vm5, %v3785_v55  ;;  %3599 = vmatpush3.bf16.msra.mxu1 %v3598_v7 }
 0x1d6   : > { %3600 = vmatprep.subr.bf16.mxu1 %v5140_v8 }
 0x1d8   : > { %3160 = vmatmul.mubr.f32.gmra.mrb[46].mxu1 %v1344_v45 }
 0x1d9   : > { %3162 = vmatprep.mubr.msk.f32.mxu1 %vm3784_vm5, %v3785_v55 }
 0x1dc   : > { %3163 = vmatmul.mubr.f32.gmra.mrb[48].mxu1 %v1352_v22 }
 0x1dd   : > { %3238 = vmatprep.mubr.msk.f32.mxu1 %vm3784_vm5, %v3785_v55 }
 0x268   : > { %v1290_v63 = vpop.f32.mrb[16].mxu0 }
 0x269   : > { %v3081_v17 = vpop.f32.mrb[17].mxu0 }
 0x26b   : > { %v1180_v58 = vpop.f32.mrb[14].mxu1 }
 0x26c   : > { %v1295_v37 = vpop.f32.mrb[18].mxu0  ;;  %v1291_v42 = vadd.f32 %v1290_v63, %v1180_v58  ;;  %v3022_v21 = vpop.f32.mrb[15].mxu1 }
 0x26d   : > { %v3084_v36 = vpop.f32.mrb[19].mxu0 }
 0x26f   : > { %v1185_v28 = vpop.f32.mrb[16].mxu1 }
 0x270   : > { %v1300_v12 = vpop.f32.mrb[20].mxu0  ;;  %v1296_v26 = vadd.f32 %v1295_v37, %v1185_v28  ;;  %v3025_v35 = vpop.f32.mrb[17].mxu1 }
 0x271   : > { %v3087_v15 = vpop.f32.mrb[21].mxu0 }
 0x273   : > { %v1190_v25 = vpop.f32.mrb[18].mxu1 }
 0x274   : > { %v1305_v62 = vpop.f32.mrb[22].mxu0  ;;  %v1301_v11 = vadd.f32 %v1300_v12, %v1190_v25  ;;  %v3028_v39 = vpop.f32.mrb[19].mxu1 }
 0x275   : > { %v3090_v9 = vpop.f32.mrb[23].mxu0 }
 0x277   : > { %v1195_v45 = vpop.f32.mrb[20].mxu1 }
 0x278   : > { %v1310_v22 = vpop.f32.mrb[24].mxu0  ;;  %v1306_v1 = vadd.f32 %v1305_v62, %v1195_v45  ;;  %v3031_v18 = vpop.f32.mrb[21].mxu1 }
 0x279   : > { %v3093_v41 = vpop.f32.mrb[25].mxu0 }
 0x27b   : > { %v1200_v13 = vpop.f32.mrb[22].mxu1 }
 0x27c   : > { %v1315_v16 = vpop.f32.mrb[26].mxu0  ;;  %v1311_v40 = vadd.f32 %v1310_v22, %v1200_v13  ;;  %v3034_v46 = vpop.f32.mrb[23].mxu1 }
 0x27d   : > { %v3096_v61 = vpop.f32.mrb[27].mxu0 }
 0x27f   : > { %v1205_v53 = vpop.f32.mrb[24].mxu1 }
 0x280   : > { %v1320_v47 = vpop.f32.mrb[28].mxu0  ;;  %v1316_v14 = vadd.f32 %v1315_v16, %v1205_v53  ;;  %v3037_v3 = vpop.f32.mrb[25].mxu1 }
 0x281   : > { %v3099_v54 = vpop.f32.mrb[29].mxu0 }
 0x283   : > { %v1210_v6 = vpop.f32.mrb[26].mxu1 }
 0x284   : > { %v1325_v60 = vpop.f32.mrb[30].mxu0  ;;  %v1321_v59 = vadd.f32 %v1320_v47, %v1210_v6  ;;  %v3040_v38 = vpop.f32.mrb[27].mxu1 }
 0x285   : > { %v3102_v52 = vpop.f32.mrb[31].mxu0 }
 0x287   : > { %v1215_v32 = vpop.f32.mrb[28].mxu1 }
 0x288   : > { %v1330_v44 = vpop.f32.mrb[32].mxu0  ;;  %v1326_v24 = vadd.f32 %v1325_v60, %v1215_v32  ;;  %v3043_v56 = vpop.f32.mrb[29].mxu1 }
 0x289   : > { %v3105_v48 = vpop.f32.mrb[33].mxu0 }
 0x28b   : > { %v1220_v5 = vpop.f32.mrb[30].mxu1 }
 0x28c   : > { %v1331_v2 = vadd.f32 %v1330_v44, %v1220_v5  ;;  %v3046_v34 = vpop.f32.mrb[31].mxu1 }
 0x28f   : > { %v1436_v49 = vpop.f32.mrb[32].mxu1 }
 0x290   : > { %v1480_v31 = vadd.f32 %v1436_v49, %v1291_v42  ;;  %v3140_v30 = vpop.f32.mrb[33].mxu1 }
 0x292   : > { %v1496_v43 = vadd.f32 %v2598_v27, %v1480_v31 }
 0x293   : > { %v1441_v33 = vpop.f32.mrb[34].mxu1 }
 0x294   : > { %v1481_v19 = vadd.f32 %v1441_v33, %v1296_v26  ;;  %v3143_v20 = vpop.f32.mrb[35].mxu1  ;;  %v1524_v7 = vmul.f32 -0.5, %v1496_v43 }
 0x296   : > { %v1497_v51 = vadd.f32 %v2598_v27, %v1481_v19 }
 0x297   : > { %v1446_v10 = vpop.f32.mrb[36].mxu1 }
 0x298   : > { %v1482_v57 = vadd.f32 %v1446_v10, %v1301_v11  ;;  %v3146_v0 = vpop.f32.mrb[37].mxu1  ;;  %v1525_v36 = vmul.f32 -0.5, %v1497_v51 }
 0x29a   : > { %v1498_v28 = vadd.f32 %v2598_v27, %v1482_v57 }
 0x29b   : > { %v1451_v23 = vpop.f32.mrb[38].mxu1 }
 0x29c   : > { %v1483_v50 = vadd.f32 %v1451_v23, %v1306_v1  ;;  %v3149_v4 = vpop.f32.mrb[39].mxu1  ;;  %v1526_v9 = vmul.f32 -0.5, %v1498_v28 }
 0x29e   : > { %v1499_v63 = vadd.f32 %v2598_v27, %v1483_v50 }
 0x29f   : > { %v1456_v17 = vpop.f32.mrb[40].mxu1 }
 0x2a0   : > { %v1512_v58 = vmul.f32 -0.5, %v1499_v63  ;;  %v1527_v37 = vadd.f32 %v1524_v7, %v1499_v63  ;;  %v1484_v42 = vadd.f32 %v1456_v17, %v1311_v40  ;;  %v3152_v21 = vpop.f32.mrb[41].mxu1  ;;  %v2614_v63 = vld [vmem:[%s5129_s7 + $0xf0] sm:$0xff]  ;;  %v2615_v17 = vld [vmem:[%s5129_s7 + $0xf8] sm:$0xff] }
 0x2a2   : > { %v1515_v12 = vadd.f32 %v1512_v58, %v1496_v43  ;;  %v1500_v26 = vadd.f32 %v2598_v27, %v1484_v42  ;;  %v1536_v35 = vadd.f32 %v1524_v7, %v1512_v58  ;;  %v3577_v42 = vpack.c.bf16 %v2615_v17, %v2614_v63  ;;  %v1913_v63 = vld [vmem:[%s5131_s9 + $0x10] sm:$0xff]  ;;  %v1914_v17 = vld [vmem:[%s5131_s9 + $0x18] sm:$0xff] }
 0x2a3   : > { %v1461_v15 = vpop.f32.mrb[42].mxu1 }
 0x2a4   : > { %v1513_v25 = vmul.f32 -0.5, %v1500_v26  ;;  %v1528_v62 = vadd.f32 %v1525_v36, %v1500_v26  ;;  %v1485_v11 = vadd.f32 %v1461_v15, %v1316_v14  ;;  %v3155_v39 = vpop.f32.mrb[43].mxu1  ;;  %3578 = vmatpush3.bf16.msra.mxu0 %v3577_v42  ;;  %v2636_v42 = vld [vmem:[%s5131_s9 + $0x98] sm:$0xff] }
 0x2a5   : > { %3603 = vmatprep.subr.bf16.mxu0 %v5140_v8 }
 0x2a6   : > { %v1516_v45 = vadd.f32 %v1513_v25, %v1497_v51  ;;  %v1501_v22 = vadd.f32 %v2598_v27, %v1485_v11  ;;  %v1537_v1 = vadd.f32 %v1525_v36, %v1513_v25 }
 0x2a7   : > { %v1466_v18 = vpop.f32.mrb[44].mxu1 }
 0x2a8   : > { %v1514_v41 = vmul.f32 -0.5, %v1501_v22  ;;  %v1529_v13 = vadd.f32 %v1526_v9, %v1501_v22  ;;  %v1486_v16 = vadd.f32 %v1466_v18, %v1321_v59  ;;  %v3158_v40 = vpop.f32.mrb[45].mxu1 }
 0x2aa   : > { %v1517_v46 = vadd.f32 %v1514_v41, %v1498_v28  ;;  %v1502_v61 = vadd.f32 %v2598_v27, %v1486_v16  ;;  %v1538_v53 = vadd.f32 %v1526_v9, %v1514_v41  ;;  %v2616_v9 = vld [vmem:[%s5129_s7 + $0x100] sm:$0xff] }
 0x2ab   : > { %v1471_v47 = vpop.f32.mrb[46].mxu1 }
 0x2ac   : > { %v1518_v3 = vmul.f32 -0.5, %v1502_v61  ;;  %v1539_v54 = vadd.f32 %v1536_v35, %v1502_v61  ;;  %v1487_v6 = vadd.f32 %v1471_v47, %v1326_v24  ;;  %v3161_v60 = vpop.f32.mrb[47].mxu1  ;;  %v2599_v24 = vld [vmem:[%s5128_s6] ss:$0 sm:$0xff]  ;;  %v2619_v61 = vld [vmem:[%s5129_s7 + $0x118] sm:$0xff] }
 0x2ae   : > { %v1521_v38 = vadd.f32 %v1518_v3, %v1515_v12  ;;  %v1530_v14 = vadd.f32 %v1527_v37, %v1518_v3  ;;  %v1503_v52 = vadd.f32 %v2598_v27, %v1487_v6  ;;  %v2621_v6 = vld [vmem:[%s5129_s7 + $0x128] sm:$0xff] }
 0x2af   : > { %v1476_v32 = vpop.f32.mrb[48].mxu1 }
 0x2b0   : > { %v1533_v44 = vmax.f32 %v1521_v38, %v1530_v14  ;;  %v1519_v56 = vmul.f32 -0.5, %v1503_v52  ;;  %v1540_v48 = vadd.f32 %v1537_v1, %v1503_v52  ;;  %v1488_v5 = vadd.f32 %v1476_v32, %v1331_v2  ;;  %v3164_v34 = vpop.f32.mrb[49].mxu1  ;;  %v1586_v2 = vld [vmem:[%s5129_s7 + $0x70] sm:$0xff]  ;;  %v2623_v52 = vld [vmem:[%s5129_s7 + $0x138] sm:$0xff] }
 0x2b1   : > { %v2622_v14 = vld [vmem:[%s5129_s7 + $0x130] sm:$0xff] }
 0x2b2   : > { %v1542_v49 = vmax.f32 %v1533_v44, %v1539_v54  ;;  %v1522_v59 = vadd.f32 %v1519_v56, %v1516_v45  ;;  %v1531_v31 = vadd.f32 %v1528_v62, %v1519_v56  ;;  %v1504_v30 = vadd.f32 %v2598_v27, %v1488_v5  ;;  %v1587_v27 = vld [vmem:[%s5129_s7 + $0x78] sm:$0xff]  ;;  %v2617_v45 = vld [vmem:[%s5129_s7 + $0x108] sm:$0xff]  ;;  %v2620_v54 = vld [vmem:[%s5129_s7 + $0x120] sm:$0xff] }
 0x2b3   : > { %v3601_v7 = vpack.c.bf16 %v1587_v27, %v1586_v2  ;;  %v3604_v16 = vpack.c.bf16 %v2617_v45, %v2616_v9  ;;  %v3610_v38 = vpack.c.bf16 %v2621_v6, %v2620_v54  ;;  %v3613_v44 = vpack.c.bf16 %v2623_v52, %v2622_v14  ;;  %v2624_v56 = vld [vmem:[%s5129_s7 + $0x140] sm:$0xff]  ;;  %v2626_v34 = vld [vmem:[%s5129_s7 + $0x150] sm:$0xff]  ;;  %v1912_v27 = vld [vmem:[%s5131_s9 + $0x8] sm:$0xff] }
 0x2b4   : > { %v1534_v33 = vmax.f32 %v1522_v59, %v1531_v31  ;;  %v1520_v19 = vmul.f32 -0.5, %v1504_v30  ;;  %v1541_v20 = vadd.f32 %v1538_v53, %v1504_v30  ;;  %v1545_v43 = vadd.f32 %v2599_v24, %v1542_v49  ;;  %v2627_v49 = vld [vmem:[%s5129_s7 + $0x158] sm:$0xff]  ;;  %v2628_v31 = vld [vmem:[%s5129_s7 + $0x160] sm:$0xff]  ;;  %v2629_v30 = vld [vmem:[%s5129_s7 + $0x168] sm:$0xff] }
 0x2b5   : > { %3602 = vmatpush3.bf16.msra.mxu1 %v3601_v7  ;;  %v3619_v59 = vpack.c.bf16 %v2627_v49, %v2626_v34  ;;  %v1911_v2 = vld [vmem:[%s5131_s9] sm:$0xff]  ;;  %v2634_v7 = vld [vmem:[%s5131_s9 + $0x88] sm:$0xff]  ;;  %v2640_v9 = vld [vmem:[%s5131_s9 + $0xb8] sm:$0xff] }
 0x2b6   : > { %v1543_v10 = vmax.f32 %v1534_v33, %v1540_v48  ;;  %v1523_v57 = vadd.f32 %v1520_v19, %v1517_v46  ;;  %v1532_v0 = vadd.f32 %v1529_v13, %v1520_v19  ;;  %v1548_v37 = vmax.f32 %v1545_v43, 0.0  ;;  %3627 = vmatprep.subr.bf16.mxu1 %v5140_v8  ;;  %v2618_v46 = vld [vmem:[%s5129_s7 + $0x110] sm:$0xff]  ;;  %v2625_v48 = vld [vmem:[%s5129_s7 + $0x148] sm:$0xff]  ;;  %v1923_v6 = vld [vmem:[%s5131_s9 + $0x60] sm:$0xff] }
 0x2b7   : > { %v3607_v3 = vpack.c.bf16 %v2619_v61, %v2618_v46  ;;  %v3616_v5 = vpack.c.bf16 %v2625_v48, %v2624_v56  ;;  %v3622_v33 = vpack.c.bf16 %v2629_v30, %v2628_v31  ;;  %v2630_v19 = vld [vmem:[%s5129_s7 + $0x170] sm:$0xff]  ;;  %v1922_v61 = vld [vmem:[%s5131_s9 + $0x58] sm:$0xff] }
 0x2b8   : > { %v1546_v23 = vadd.f32 %v2599_v24, %v1543_v10  ;;  %v1535_v50 = vmax.f32 %v1523_v57, %v1532_v0  ;;  %v1551_v28 = vrot.slane %v1548_v37, 1  ;;  %v1921_v46 = vld [vmem:[%s5131_s9 + $0x50] sm:$0xff] }
 0x2ba   : > { %v1549_v4 = vmax.f32 %v1546_v23, 0.0  ;;  %v1544_v51 = vmax.f32 %v1535_v50, %v1541_v20  ;;  %v2631_v20 = vld [vmem:[%s5129_s7 + $0x178] sm:$0xff] }
 0x2bc   : > { %v1547_v58 = vadd.f32 %v2599_v24, %v1544_v51  ;;  %v1552_v36 = vrot.slane %v1549_v4, 1  ;;  %v3625_v24 = vpack.c.bf16 %v2631_v20, %v2630_v19  ;;  %v3652_v51 = vpack.c.bf16 %v1912_v27, %v1911_v2  ;;  %v2645_v2 = vld [vmem:[%s5131_s9 + $0xe0] sm:$0xff]  ;;  %v2646_v27 = vld [vmem:[%s5131_s9 + $0xe8] sm:$0xff] }
 0x2be   : > { %v1550_v21 = vmax.f32 %v1547_v58, 0.0  ;;  %v1555_v15 = vsel %vm1006_vm4, %v1551_v28, %v1552_v36 }
 0x2c0   : > { %v1553_v12 = vrot.slane %v1550_v21, 1 }
 0x2c2   : > { %v1556_v26 = vsel %vm1006_vm4, %v1553_v12, %v1551_v28  ;;  %v1554_v35 = vsel %vm1006_vm4, %v1552_v36, %v1553_v12  ;;  %v1915_v28 = vld [vmem:[%s5131_s9 + $0x20] sm:$0xff]  ;;  %v1916_v12 = vld [vmem:[%s5131_s9 + $0x28] sm:$0xff] }
 0x2c3   : > { %1564 = vrot.lane.b32.xlu1 %v1556_v26, %s3786_s21  ;;  %v3764_v25 = vpack.i.bf16 %v1554_v35, %v1555_v15  ;;  %v2637_v26 = vld [vmem:[%s5131_s9 + $0xa0] sm:$0xff]  ;;  %v2638_v35 = vld [vmem:[%s5131_s9 + $0xa8] sm:$0xff]  ;;  %v3658_v15 = vpack.c.bf16 %v1916_v12, %v1915_v28  ;;  %v2647_v28 = vld [vmem:[%s5131_s9 + $0xf0] sm:$0xff] }
 0x2c4   : > { %v2648_v12 = vld [vmem:[%s5131_s9 + $0xf8] sm:$0xff] }
 0x2c5   : > { %3765 = vrot.lane.b32.xlu0 %v3764_v25, %s3786_s21  ;;  %v3634_v25 = vpack.c.bf16 %v2638_v35, %v2637_v26  ;;  %v3649_v26 = vpack.c.bf16 %v2648_v12, %v2647_v28  ;;  %v2677_v28 = vld [vmem:[%s5131_s9 + $0x1e0] sm:$0xff]  ;;  %v2678_v12 = vld [vmem:[%s5131_s9 + $0x1e8] sm:$0xff] }
 0x335   : > { %v1565_v22 = vpop.permute.xlu1 %1564 }
 0x336   : > { %v4683_v40 = vsel %vm1052_vm6, %v1550_v21, %v1565_v22  ;;  %v3655_v21 = vpack.c.bf16 %v1914_v17, %v1913_v63 }
 0x337   : > { %v3766_v62 = vpop.permute.xlu0 %3765  ;;  %v1590_v47 = vrot.slane %v4683_v40, 2  ;;  %v1773_v43 = vrot.slane %v4683_v40, 4 }
 0x338   : > { %v3768_v11 = vunpack.i.h.bf16 %v3766_v62  ;;  %v3767_v39 = vunpack.i.l.bf16 %v3766_v62  ;;  %v1917_v62 = vld [vmem:[%s5131_s9 + $0x30] sm:$0xff] }
 0x33a   : > { %v4674_v1 = vsel %vm1052_vm6, %v1549_v4, %v3768_v11  ;;  %v4677_v18 = vsel %vm1052_vm6, %v1548_v37, %v3767_v39  ;;  %v2633_v4 = vld [vmem:[%s5131_s9 + $0x80] sm:$0xff]  ;;  %v2635_v37 = vld [vmem:[%s5131_s9 + $0x90] sm:$0xff]  ;;  %v1918_v11 = vld [vmem:[%s5131_s9 + $0x38] sm:$0xff] }
 0x33b   : > { %v1589_v41 = vrot.slane %v4674_v1, 2  ;;  %v1588_v13 = vrot.slane %v4677_v18, 2  ;;  %3239 = vmatmul.mubr.f32.vlgmr.msra.gmra.mrb[50].mxu1 %v4677_v18  ;;  %v1772_v10 = vrot.slane %v4674_v1, 4  ;;  %v1771_v57 = vrot.slane %v4677_v18, 4  ;;  %v2639_v39 = vld [vmem:[%s5131_s9 + $0xb0] sm:$0xff]  ;;  %v1920_v18 = vld [vmem:[%s5131_s9 + $0x48] sm:$0xff] }
 0x33c   : > { %3241 = vmatprep.mubr.msk.f32.mxu1 %vm3784_vm5, %v3785_v55  ;;  %v3628_v58 = vpack.c.bf16 %v2634_v7, %v2633_v4  ;;  %v3631_v36 = vpack.c.bf16 %v2636_v42, %v2635_v37  ;;  %v3661_v45 = vpack.c.bf16 %v1918_v11, %v1917_v62  ;;  %v3637_v22 = vpack.c.bf16 %v2640_v9, %v2639_v39  ;;  %v1926_v7 = vld [vmem:[%s5131_s9 + $0x78] sm:$0xff] }
 0x33d   : > { %v1592_v53 = vsel %vm1087_vm7, %v1588_v13, %v1589_v41  ;;  %v1591_v60 = vsel %vm1087_vm7, %v1589_v41, %v1590_v47  ;;  %v1593_v32 = vsel %vm1087_vm7, %v1590_v47, %v1588_v13  ;;  %v1775_v0 = vsel %vm1343_vm8, %v1771_v57, %v1772_v10  ;;  %v2641_v41 = vld [vmem:[%s5131_s9 + $0xc0] sm:$0xff]  ;;  %v2642_v13 = vld [vmem:[%s5131_s9 + $0xc8] sm:$0xff]  ;;  %v2644_v47 = vld [vmem:[%s5131_s9 + $0xd8] sm:$0xff] }
 0x33e   : > { %3198 = vmatmul.mubr.f32.vlgmr.msra.gmra.mrb[34].mxu0 %v1592_v53  ;;  %v1774_v23 = vsel %vm1343_vm8, %v1772_v10, %v1773_v43  ;;  %v1776_v50 = vsel %vm1343_vm8, %v1773_v43, %v1771_v57  ;;  %3629 = vmatpush3.bf16.msra.mxu1 %v3628_v58  ;;  %v2643_v53 = vld [vmem:[%s5131_s9 + $0xd0] sm:$0xff]  ;;  %v3646_v4 = vpack.c.bf16 %v2646_v27, %v2645_v2  ;;  %v2673_v2 = vld [vmem:[%s5131_s9 + $0x1c0] sm:$0xff]  ;;  %v2674_v27 = vld [vmem:[%s5131_s9 + $0x1c8] sm:$0xff] }
 0x33f   : > { %3605 = vmatpush3.bf16.msra.mxu0 %v3604_v16  ;;  %3242 = vmatmul.mubr.f32.gmra.mrb[52].mxu1 %v4674_v1  ;;  %v1919_v1 = vld [vmem:[%s5131_s9 + $0x40] sm:$0xff]  ;;  %v3643_v54 = vpack.c.bf16 %v2644_v47, %v2643_v53  ;;  %v2650_v53 = vld [vmem:[%s5131_s9 + $0x108] sm:$0xff] }
 0x340   : > { %3200 = vmatprep.mubr.msk.f32.mxu0 %vm3784_vm5, %v3785_v55  ;;  %3606 = vmatprep.subr.bf16.mxu0 %v5140_v8  ;;  %v3664_v16 = vpack.c.bf16 %v1920_v18, %v1919_v1  ;;  %v2665_v18 = vld [vmem:[%s5131_s9 + $0x180] sm:$0xff] }
 0x341   : > { %3244 = vmatprep.mubr.msk.f32.mxu1 %vm3784_vm5, %v3785_v55  ;;  %3630 = vmatprep.subr.bf16.mxu1 %v5140_v8 }
 0x342   : > { %3201 = vmatmul.mubr.f32.gmra.mrb[36].mxu0 %v1591_v60  ;;  %3632 = vmatpush3.bf16.msra.mxu1 %v3631_v36  ;;  %v1924_v60 = vld [vmem:[%s5131_s9 + $0x68] sm:$0xff] }
 0x343   : > { %3608 = vmatpush3.bf16.msra.mxu0 %v3607_v3  ;;  %3245 = vmatmul.mubr.f32.gmra.mrb[54].mxu1 %v4683_v40  ;;  %v3640_v40 = vpack.c.bf16 %v2642_v13, %v2641_v41  ;;  %v3667_v3 = vpack.c.bf16 %v1922_v61, %v1921_v46  ;;  %v2666_v41 = vld [vmem:[%s5131_s9 + $0x188] sm:$0xff]  ;;  %v2649_v61 = vld [vmem:[%s5131_s9 + $0x100] sm:$0xff] }
 0x344   : > { %3203 = vmatprep.mubr.msk.f32.mxu0 %vm3784_vm5, %v3785_v55  ;;  %3609 = vmatprep.subr.bf16.mxu0 %v5140_v8  ;;  %v3700_v46 = vpack.c.bf16 %v2666_v41, %v2665_v18 }
 0x345   : > { %3320 = vmatprep.mubr.msk.f32.mxu1 %vm3784_vm5, %v3785_v55  ;;  %3633 = vmatprep.subr.bf16.mxu1 %v5140_v8 }
 0x346   : > { %3204 = vmatmul.mubr.f32.gmra.mrb[38].mxu0 %v1593_v32  ;;  %3635 = vmatpush3.bf16.msra.mxu1 %v3634_v25 }
 0x347   : > { %3611 = vmatpush3.bf16.msra.mxu0 %v3610_v38  ;;  %3279 = vmatprep.mubr.msk.f32.mxu0 %vm3784_vm5, %v3785_v55  ;;  %v3670_v38 = vpack.c.bf16 %v1924_v60, %v1923_v6 }
 0x348   : > { %3612 = vmatprep.subr.bf16.mxu0 %v5140_v8  ;;  %3636 = vmatprep.subr.bf16.mxu1 %v5140_v8 }
 0x34a   : > { %3638 = vmatpush3.bf16.msra.mxu1 %v3637_v22 }
 0x34b   : > { %3614 = vmatpush3.bf16.msra.mxu0 %v3613_v44  ;;  %3639 = vmatprep.subr.bf16.mxu1 %v5140_v8 }
 0x34c   : > { %3615 = vmatprep.subr.bf16.mxu0 %v5140_v8 }
 0x34e   : > { %3641 = vmatpush3.bf16.msra.mxu1 %v3640_v40 }
 0x34f   : > { %3617 = vmatpush3.bf16.msra.mxu0 %v3616_v5  ;;  %3642 = vmatprep.subr.bf16.mxu1 %v5140_v8 }
 0x350   : > { %3618 = vmatprep.subr.bf16.mxu0 %v5140_v8 }
 0x352   : > { %3644 = vmatpush3.bf16.msra.mxu1 %v3643_v54  ;;  %v2668_v54 = vld [vmem:[%s5131_s9 + $0x198] sm:$0xff] }
 0x353   : > { %3620 = vmatpush3.bf16.msra.mxu0 %v3619_v59  ;;  %3645 = vmatprep.subr.bf16.mxu1 %v5140_v8 }
 0x354   : > { %3621 = vmatprep.subr.bf16.mxu0 %v5140_v8 }
 0x356   : > { %3647 = vmatpush3.bf16.msra.mxu1 %v3646_v4 }
 0x357   : > { %3623 = vmatpush3.bf16.msra.mxu0 %v3622_v33  ;;  %3648 = vmatprep.subr.bf16.mxu1 %v5140_v8 }
 0x358   : > { %3624 = vmatprep.subr.bf16.mxu0 %v5140_v8 }
 0x35a   : > { %3650 = vmatpush3.bf16.msra.mxu1 %v3649_v26 }
 0x35b   : > { %3626 = vmatpush3.bf16.msra.mxu0 %v3625_v24  ;;  %3675 = vmatprep.subr.bf16.mxu1 %v5140_v8 }
 0x35c   : > { %3651 = vmatprep.subr.bf16.mxu0 %v5140_v8 }
 0x35e   : > { %3280 = vmatmul.mubr.f32.vlgmr.msra.gmra.mrb[40].mxu0 %v1775_v0  ;;  %v2632_v0 = vld [vmem:[%s5130_s8] ss:$0 sm:$0xff] }
 0x35f   : > { %3282 = vmatprep.mubr.msk.f32.mxu0 %vm3784_vm5, %v3785_v55  ;;  %3653 = vmatpush3.bf16.msra.mxu0 %v3652_v51  ;;  %v1925_v51 = vld [vmem:[%s5131_s9 + $0x70] sm:$0xff] }
 0x360   : > { %3654 = vmatprep.subr.bf16.mxu0 %v5140_v8  ;;  %v3673_v58 = vpack.c.bf16 %v1926_v7, %v1925_v51  ;;  %v3712_v51 = vpack.c.bf16 %v2674_v27, %v2673_v2  ;;  %v2657_v7 = vld [vmem:[%s5131_s9 + $0x140] sm:$0xff] }
 0x362   : > { %3283 = vmatmul.mubr.f32.gmra.mrb[42].mxu0 %v1774_v23 }
 0x363   : > { %3285 = vmatprep.mubr.msk.f32.mxu0 %vm3784_vm5, %v3785_v55  ;;  %3656 = vmatpush3.bf16.msra.mxu0 %v3655_v21 }
 0x364   : > { %3657 = vmatprep.subr.bf16.mxu0 %v5140_v8 }
 0x366   : > { %3286 = vmatmul.mubr.f32.gmra.mrb[44].mxu0 %v1776_v50 }
 0x367   : > { %3361 = vmatprep.mubr.msk.f32.mxu0 %vm3784_vm5, %v3785_v55  ;;  %3659 = vmatpush3.bf16.msra.mxu0 %v3658_v15 }
 0x368   : > { %3660 = vmatprep.subr.bf16.mxu0 %v5140_v8 }
 0x36b   : > { %3662 = vmatpush3.bf16.msra.mxu0 %v3661_v45 }
 0x36c   : > { %3663 = vmatprep.subr.bf16.mxu0 %v5140_v8 }
 0x36f   : > { %3665 = vmatpush3.bf16.msra.mxu0 %v3664_v16 }
 0x370   : > { %3666 = vmatprep.subr.bf16.mxu0 %v5140_v8 }
 0x373   : > { %3668 = vmatpush3.bf16.msra.mxu0 %v3667_v3  ;;  %v2667_v3 = vld [vmem:[%s5131_s9 + $0x190] sm:$0xff] }
 0x374   : > { %3669 = vmatprep.subr.bf16.mxu0 %v5140_v8 }
 0x377   : > { %3671 = vmatpush3.bf16.msra.mxu0 %v3670_v38 }
 0x378   : > { %3672 = vmatprep.subr.bf16.mxu0 %v5140_v8 }
 0x37b   : > { %3674 = vmatpush3.bf16.msra.mxu0 %v3673_v58  ;;  %v2676_v58 = vld [vmem:[%s5131_s9 + $0x1d8] sm:$0xff] }
 0x37c   : > { %3699 = vmatprep.subr.bf16.mxu0 %v5140_v8 }
 0x40e   : > { %v1757_v14 = vpop.f32.mrb[50].mxu1 }
 0x40f   : > { %v3240_v52 = vpop.f32.mrb[51].mxu1 }
 0x410   : > { %v3676_v52 = vpack.c.bf16 %v2650_v53, %v2649_v61 }
 0x411   : > { %v1677_v32 = vpop.f32.mrb[34].mxu0 }
 0x412   : > { %v1758_v44 = vadd.f32 %v1757_v14, %v1677_v32  ;;  %v3199_v56 = vpop.f32.mrb[35].mxu0  ;;  %v1762_v48 = vpop.f32.mrb[52].mxu1 }
 0x413   : > { %v3243_v5 = vpop.f32.mrb[53].mxu1  ;;  %v2651_v56 = vld [vmem:[%s5131_s9 + $0x110] sm:$0xff] }
 0x415   : > { %v1682_v34 = vpop.f32.mrb[36].mxu0 }
 0x416   : > { %v1763_v49 = vadd.f32 %v1762_v48, %v1682_v34  ;;  %v3202_v59 = vpop.f32.mrb[37].mxu0  ;;  %v1767_v31 = vpop.f32.mrb[54].mxu1  ;;  %v2652_v48 = vld [vmem:[%s5131_s9 + $0x118] sm:$0xff]  ;;  %v2669_v34 = vld [vmem:[%s5131_s9 + $0x1a0] sm:$0xff] }
 0x417   : > { %v3246_v30 = vpop.f32.mrb[55].mxu1 }
 0x419   : > { %v1687_v33 = vpop.f32.mrb[38].mxu0 }
 0x41a   : > { %v1768_v19 = vadd.f32 %v1767_v31, %v1687_v33  ;;  %v3205_v20 = vpop.f32.mrb[39].mxu0  ;;  %v3679_v31 = vpack.c.bf16 %v2652_v48, %v2651_v56  ;;  %v2653_v33 = vld [vmem:[%s5131_s9 + $0x120] sm:$0xff]  ;;  %v2341_v56 = vld [vmem:[%s5133_s11 + $0x28] sm:$0xff] }
 0x431   : > { %v1860_v24 = vpop.f32.mrb[40].mxu0 }
 0x432   : > { %v1874_v10 = vadd.f32 %v1860_v24, %v1758_v44  ;;  %v3281_v57 = vpop.f32.mrb[41].mxu0  ;;  %v3703_v44 = vpack.c.bf16 %v2668_v54, %v2667_v3  ;;  %v2671_v24 = vld [vmem:[%s5131_s9 + $0x1b0] sm:$0xff] }
 0x434   : > { %v1884_v63 = vadd.f32 %v2632_v0, %v1874_v10  ;;  %v2672_v10 = vld [vmem:[%s5131_s9 + $0x1b8] sm:$0xff] }
 0x435   : > { %v1865_v43 = vpop.f32.mrb[42].mxu0 }
 0x436   : > { %v1875_v23 = vadd.f32 %v1865_v43, %v1763_v49  ;;  %v3284_v50 = vpop.f32.mrb[43].mxu0  ;;  %v1887_v35 = vmax.f32 %v1884_v63, 0.0  ;;  %v2670_v49 = vld [vmem:[%s5131_s9 + $0x1a8] sm:$0xff]  ;;  %v2655_v43 = vld [vmem:[%s5131_s9 + $0x130] sm:$0xff] }
 0x437   : > { %v3706_v30 = vpack.c.bf16 %v2670_v49, %v2669_v34  ;;  %v2658_v63 = vld [vmem:[%s5131_s9 + $0x148] sm:$0xff]  ;;  %v2343_v34 = vld [vmem:[%s5133_s11 + $0x38] sm:$0xff] }
 0x438   : > { %v1885_v17 = vadd.f32 %v2632_v0, %v1875_v23  ;;  %v1890_v11 = vrot.slane %v1887_v35, 1  ;;  %v2656_v23 = vld [vmem:[%s5131_s9 + $0x138] sm:$0xff] }
 0x439   : > { %v1870_v37 = vpop.f32.mrb[44].mxu0  ;;  %v3685_v4 = vpack.c.bf16 %v2656_v23, %v2655_v43 }
 0x43a   : > { %v1888_v42 = vmax.f32 %v1885_v17, 0.0  ;;  %v1876_v21 = vadd.f32 %v1870_v37, %v1768_v19  ;;  %v3287_v36 = vpop.f32.mrb[45].mxu0  ;;  %v2654_v19 = vld [vmem:[%s5131_s9 + $0x128] sm:$0xff]  ;;  %v2675_v17 = vld [vmem:[%s5131_s9 + $0x1d0] sm:$0xff]  ;;  %v3688_v37 = vpack.c.bf16 %v2658_v63, %v2657_v7 }
 0x43b   : > { %v3682_v57 = vpack.c.bf16 %v2654_v19, %v2653_v33  ;;  %v2660_v36 = vld [vmem:[%s5131_s9 + $0x158] sm:$0xff] }
 0x43c   : > { %v1886_v15 = vadd.f32 %v2632_v0, %v1876_v21  ;;  %v1891_v25 = vrot.slane %v1888_v42, 1  ;;  %v3709_v0 = vpack.c.bf16 %v2672_v10, %v2671_v24  ;;  %v2659_v21 = vld [vmem:[%s5131_s9 + $0x150] sm:$0xff] }
 0x43d   : > { %v3691_v26 = vpack.c.bf16 %v2660_v36, %v2659_v21 }
 0x43e   : > { %v1889_v62 = vmax.f32 %v1886_v15, 0.0  ;;  %v1894_v22 = vsel %vm1006_vm4, %v1890_v11, %v1891_v25  ;;  %v2661_v15 = vld [vmem:[%s5131_s9 + $0x160] sm:$0xff] }
 0x440   : > { %v1892_v39 = vrot.slane %v1889_v62, 1 }
 0x442   : > { %v1895_v9 = vsel %vm1006_vm4, %v1892_v39, %v1890_v11  ;;  %v1893_v45 = vsel %vm1006_vm4, %v1891_v25, %v1892_v39  ;;  %v2662_v25 = vld [vmem:[%s5131_s9 + $0x168] sm:$0xff]  ;;  %v2680_v11 = vld [vmem:[%s5131_s9 + $0x1f8] sm:$0xff] }
 0x443   : > { %1903 = vrot.lane.b32.xlu1 %v1895_v9, %s3786_s21  ;;  %v3769_v1 = vpack.i.bf16 %v1893_v45, %v1894_v22  ;;  %v3694_v39 = vpack.c.bf16 %v2662_v25, %v2661_v15  ;;  %v2663_v45 = vld [vmem:[%s5131_s9 + $0x170] sm:$0xff]  ;;  %v2664_v22 = vld [vmem:[%s5131_s9 + $0x178] sm:$0xff] }
 0x444   : > { %v3697_v41 = vpack.c.bf16 %v2664_v22, %v2663_v45 }
 0x445   : > { %3770 = vrot.lane.b32.xlu0 %v3769_v1, %s3786_s21 }
 0x4b5   : > { %v1904_v47 = vpop.permute.xlu1 %1903 }
 0x4b6   : > { %v4922_v32 = vsel %vm1052_vm6, %v1889_v62, %v1904_v47  ;;  %v2679_v62 = vld [vmem:[%s5131_s9 + $0x1f0] sm:$0xff] }
 0x4b7   : > { %v3771_v13 = vpop.permute.xlu0 %3770  ;;  %v1929_v59 = vrot.slane %v4922_v32, 2  ;;  %v3721_v9 = vpack.c.bf16 %v2680_v11, %v2679_v62  ;;  %v2112_v47 = vrot.slane %v4922_v32, 4 }
 0x4b8   : > { %v3773_v16 = vunpack.i.h.bf16 %v3771_v13  ;;  %v3772_v40 = vunpack.i.l.bf16 %v3771_v13 }
 0x4ba   : > { %v4913_v6 = vsel %vm1052_vm6, %v1888_v42, %v3773_v16  ;;  %v4916_v60 = vsel %vm1052_vm6, %v1887_v35, %v3772_v40  ;;  %v3715_v42 = vpack.c.bf16 %v2676_v58, %v2675_v17  ;;  %v3718_v35 = vpack.c.bf16 %v2678_v12, %v2677_v28  ;;  %v2681_v58 = vld [vmem:[%s5132_s10] ss:$0 sm:$0xff] }
 0x4bb   : > { %v1928_v38 = vrot.slane %v4913_v6, 2  ;;  %v1927_v14 = vrot.slane %v4916_v60, 2  ;;  %3362 = vmatmul.mubr.f32.vlgmr.msra.gmra.mrb[46].mxu0 %v4916_v60  ;;  %v2217_v1 = vrot.slane %v4913_v6, 6  ;;  %v2216_v18 = vrot.slane %v4916_v60, 6 }
 0x4bc   : > { %3701 = vmatpush3.bf16.msra.mxu0 %v3700_v46  ;;  %3364 = vmatprep.mubr.msk.f32.mxu0 %vm3784_vm5, %v3785_v55  ;;  %v2111_v13 = vrot.slane %v4913_v6, 4  ;;  %v2110_v16 = vrot.slane %v4916_v60, 4  ;;  %v2218_v46 = vrot.slane %v4922_v32, 6  ;;  %v2336_v60 = vld [vmem:[%s5133_s11] sm:$0xff] }
 0x4bd   : > { %v1931_v5 = vsel %vm1087_vm7, %v1927_v14, %v1928_v38  ;;  %3702 = vmatprep.subr.bf16.mxu0 %v5140_v8  ;;  %v1930_v20 = vsel %vm1087_vm7, %v1928_v38, %v1929_v59  ;;  %v1932_v50 = vsel %vm1087_vm7, %v1929_v59, %v1927_v14  ;;  %v2221_v40 = vsel %vm2219_vm9, %v2216_v18, %v2217_v1  ;;  %v2337_v38 = vld [vmem:[%s5133_s11 + $0x8] sm:$0xff] }
 0x4be   : > { %3321 = vmatmul.mubr.f32.vlgmr.msra.gmra.mrb[56].mxu1 %v1931_v5  ;;  %v2114_v61 = vsel %vm1343_vm8, %v2110_v16, %v2111_v13  ;;  %v2220_v53 = vsel %vm2219_vm9, %v2217_v1, %v2218_v46  ;;  %v2113_v3 = vsel %vm1343_vm8, %v2111_v13, %v2112_v47  ;;  %v2222_v54 = vsel %vm2219_vm9, %v2218_v46, %v2216_v18  ;;  %v2342_v5 = vld [vmem:[%s5133_s11 + $0x30] sm:$0xff] }
 0x4bf   : > { %3677 = vmatpush3.bf16.msra.mxu1 %v3676_v52  ;;  %3365 = vmatmul.mubr.f32.gmra.mrb[48].mxu0 %v4913_v6  ;;  %v2115_v6 = vsel %vm1343_vm8, %v2112_v47, %v2110_v16  ;;  %v3724_v14 = vpack.c.bf16 %v2337_v38, %v2336_v60  ;;  %v2339_v52 = vld [vmem:[%s5133_s11 + $0x18] sm:$0xff]  ;;  %v3733_v49 = vpack.c.bf16 %v2343_v34, %v2342_v5 }
 0x4c0   : > { %3704 = vmatpush3.bf16.msra.mxu0 %v3703_v44  ;;  %3323 = vmatprep.mubr.msk.f32.mxu1 %vm3784_vm5, %v3785_v55  ;;  %v2340_v44 = vld [vmem:[%s5133_s11 + $0x20] sm:$0xff] }
 0x4c1   : > { %3678 = vmatprep.subr.bf16.mxu1 %v5140_v8  ;;  %3367 = vmatprep.mubr.msk.f32.mxu0 %vm3784_vm5, %v3785_v55  ;;  %v3730_v48 = vpack.c.bf16 %v2341_v56, %v2340_v44 }
 0x4c2   : > { %3324 = vmatmul.mubr.f32.gmra.mrb[58].mxu1 %v1930_v20  ;;  %3705 = vmatprep.subr.bf16.mxu0 %v5140_v8 }
 0x4c3   : > { %3680 = vmatpush3.bf16.msra.mxu1 %v3679_v31  ;;  %3368 = vmatmul.mubr.f32.gmra.mrb[50].mxu0 %v4922_v32  ;;  %v3727_v32 = vpack.c.bf16 %v2339_v52, %v2338_v29 }
 0x4c4   : > { %3707 = vmatpush3.bf16.msra.mxu0 %v3706_v30  ;;  %3326 = vmatprep.mubr.msk.f32.mxu1 %vm3784_vm5, %v3785_v55 }
 0x4c5   : > { %3681 = vmatprep.subr.bf16.mxu1 %v5140_v8  ;;  %3708 = vmatprep.subr.bf16.mxu0 %v5140_v8 }
 0x4c6   : > { %3327 = vmatmul.mubr.f32.gmra.mrb[60].mxu1 %v1932_v50  ;;  %3443 = vmatprep.mubr.msk.f32.mxu0 %vm3784_vm5, %v3785_v55 }
 0x4c7   : > { %3683 = vmatpush3.bf16.msra.mxu1 %v3682_v57  ;;  %3402 = vmatprep.mubr.msk.f32.mxu1 %vm3784_vm5, %v3785_v55 }
 0x4c8   : > { %3710 = vmatpush3.bf16.msra.mxu0 %v3709_v0  ;;  %3684 = vmatprep.subr.bf16.mxu1 %v5140_v8 }
 0x4c9   : > { %3711 = vmatprep.subr.bf16.mxu0 %v5140_v8 }
 0x4cb   : > { %3686 = vmatpush3.bf16.msra.mxu1 %v3685_v4 }
 0x4cc   : > { %3713 = vmatpush3.bf16.msra.mxu0 %v3712_v51  ;;  %3687 = vmatprep.subr.bf16.mxu1 %v5140_v8 }
 0x4cd   : > { %3714 = vmatprep.subr.bf16.mxu0 %v5140_v8 }
 0x4cf   : > { %3689 = vmatpush3.bf16.msra.mxu1 %v3688_v37 }
 0x4d0   : > { %3716 = vmatpush3.bf16.msra.mxu0 %v3715_v42  ;;  %3690 = vmatprep.subr.bf16.mxu1 %v5140_v8 }
 0x4d1   : > { %3717 = vmatprep.subr.bf16.mxu0 %v5140_v8 }
 0x4d3   : > { %3692 = vmatpush3.bf16.msra.mxu1 %v3691_v26 }
 0x4d4   : > { %3719 = vmatpush3.bf16.msra.mxu0 %v3718_v35  ;;  %3693 = vmatprep.subr.bf16.mxu1 %v5140_v8 }
 0x4d5   : > { %3720 = vmatprep.subr.bf16.mxu0 %v5140_v8 }
 0x4d7   : > { %3695 = vmatpush3.bf16.msra.mxu1 %v3694_v39 }
 0x4d8   : > { %3722 = vmatpush3.bf16.msra.mxu0 %v3721_v9  ;;  %3696 = vmatprep.subr.bf16.mxu1 %v5140_v8 }
 0x4d9   : > { %3723 = vmatprep.subr.bf16.mxu0 %v5140_v8 }
 0x4db   : > { %3698 = vmatpush3.bf16.msra.mxu1 %v3697_v41  ;;  %3444 = vmatmul.mubr.f32.vlgmr.msra.gmra.mrb[52].mxu0 %v2221_v40  ;;  %v2682_v41 = vld [vmem:[%s5134_s12] ss:$0 sm:$0xff] }
 0x4dc   : > { %3446 = vmatprep.mubr.msk.f32.mxu0 %vm3784_vm5, %v3785_v55  ;;  %3737 = vmatprep.subr.bf16.mxu1 %v5140_v8 }
 0x4dd   : > { %3725 = vmatpush3.bf16.msra.mxu0 %v3724_v14 }
 0x4de   : > { %3403 = vmatmul.mubr.f32.vlgmr.msra.gmra.mrb[62].mxu1 %v2114_v61  ;;  %3726 = vmatprep.subr.bf16.mxu0 %v5140_v8 }
 0x4df   : > { %3447 = vmatmul.mubr.f32.gmra.mrb[54].mxu0 %v2220_v53  ;;  %3405 = vmatprep.mubr.msk.f32.mxu1 %vm3784_vm5, %v3785_v55 }
 0x4e0   : > { %3449 = vmatprep.mubr.msk.f32.mxu0 %vm3784_vm5, %v3785_v55  ;;  %3741 = vmatpush3.bf16.msra.mxu1 %v3724_v14 }
 0x4e1   : > { %3738 = vmatprep.subr.bf16.mxu1 %v5140_v8  ;;  %3728 = vmatpush3.bf16.msra.mxu0 %v3727_v32 }
 0x4e2   : > { %3406 = vmatmul.mubr.f32.gmra.mrb[64].mxu1 %v2113_v3  ;;  %3729 = vmatprep.subr.bf16.mxu0 %v5140_v8 }
 0x4e3   : > { %3450 = vmatmul.mubr.f32.gmra.mrb[56].mxu0 %v2222_v54  ;;  %3408 = vmatprep.mubr.msk.f32.mxu1 %vm3784_vm5, %v3785_v55 }
 0x4e4   : > { %3468 = vmatprep.mubr.msk.f32.mxu0 %vm3784_vm5, %v3785_v55  ;;  %3742 = vmatpush3.bf16.msra.mxu1 %v3727_v32 }
 0x4e5   : > { %3739 = vmatprep.subr.bf16.mxu1 %v5140_v8  ;;  %3731 = vmatpush3.bf16.msra.mxu0 %v3730_v48 }
 0x4e6   : > { %3409 = vmatmul.mubr.f32.gmra.mrb[66].mxu1 %v2115_v6  ;;  %3732 = vmatprep.subr.bf16.mxu0 %v5140_v8 }
 0x4e7   : > { %3474 = vmatprep.mubr.msk.f32.mxu1 %vm3784_vm5, %v3785_v55 }
 0x4e8   : > { %3743 = vmatpush3.bf16.msra.mxu1 %v3730_v48 }
 0x4e9   : > { %3740 = vmatprep.subr.bf16.mxu1 %v5140_v8  ;;  %3734 = vmatpush3.bf16.msra.mxu0 %v3733_v49 }
 0x4ec   : > { %3744 = vmatpush3.bf16.msra.mxu1 %v3733_v49 }
 0x58e   : > { %v2096_v59 = vpop.f32.mrb[46].mxu0 }
 0x58f   : > { %v3363_v31 = vpop.f32.mrb[47].mxu0 }
 0x591   : > { %v2016_v30 = vpop.f32.mrb[56].mxu1 }
 0x592   : > { %v2097_v33 = vadd.f32 %v2096_v59, %v2016_v30  ;;  %v3322_v19 = vpop.f32.mrb[57].mxu1  ;;  %v2101_v20 = vpop.f32.mrb[48].mxu0 }
 0x593   : > { %v3366_v24 = vpop.f32.mrb[49].mxu0 }
 0x595   : > { %v2021_v10 = vpop.f32.mrb[58].mxu1 }
 0x596   : > { %v2102_v57 = vadd.f32 %v2101_v20, %v2021_v10  ;;  %v3325_v0 = vpop.f32.mrb[59].mxu1  ;;  %v2106_v43 = vpop.f32.mrb[50].mxu0 }
 0x597   : > { %v3369_v23 = vpop.f32.mrb[51].mxu0 }
 0x599   : > { %v2026_v50 = vpop.f32.mrb[60].mxu1 }
 0x59a   : > { %v2107_v2 = vadd.f32 %v2106_v43, %v2026_v50  ;;  %v3328_v27 = vpop.f32.mrb[61].mxu1 }
 0x5ae   : > { %v2306_v8 = vpop.f32.mrb[52].mxu0 }
 0x5af   : > { %v3445_v4 = vpop.f32.mrb[53].mxu0 }
 0x5b1   : > { %v2199_v51 = vpop.f32.mrb[62].mxu1 }
 0x5b2   : > { %v2213_v7 = vadd.f32 %v2199_v51, %v2097_v33  ;;  %v3404_v63 = vpop.f32.mrb[63].mxu1  ;;  %v2311_v17 = vpop.f32.mrb[54].mxu0 }
 0x5b3   : > { %v3448_v37 = vpop.f32.mrb[55].mxu0 }
 0x5b4   : > { %v2320_v42 = vadd.f32 %v2306_v8, %v2213_v7 }
 0x5b5   : > { %v2204_v21 = vpop.f32.mrb[64].mxu1 }
 0x5b6   : > { %v2330_v36 = vadd.f32 %v2681_v58, %v2320_v42  ;;  %v2214_v28 = vadd.f32 %v2204_v21, %v2102_v57  ;;  %v3407_v12 = vpop.f32.mrb[65].mxu1  ;;  %v2316_v26 = vpop.f32.mrb[56].mxu0 }
 0x5b7   : > { %v3451_v35 = vpop.f32.mrb[57].mxu0 }
 0x5b8   : > { %v2333_v15 = vmax.f32 %v2330_v36, 0.0  ;;  %v2321_v25 = vadd.f32 %v2311_v17, %v2214_v28 }
 0x5b9   : > { %v2209_v62 = vpop.f32.mrb[66].mxu1 }
 0x5ba   : > { %v2331_v11 = vadd.f32 %v2681_v58, %v2321_v25  ;;  %v2215_v39 = vadd.f32 %v2209_v62, %v2107_v2  ;;  %v3410_v9 = vpop.f32.mrb[67].mxu1  ;;  %3469 = vmatmul.mubr.msk.f32.vlgmr.msra.gmra.mrb[58].mxu0 %vm1052_vm6, %v2333_v15  ;;  %2438 = vst.msk [vmem:[%s476_s26] sm:$0xff] %vm1052_vm6, %v2333_v15 }
 0x5bb   : > { %3471 = vmatprep.mubr.msk.f32.mxu0 %vm3784_vm5, %v3785_v55 }
 0x5bc   : > { %v2334_v45 = vmax.f32 %v2331_v11, 0.0  ;;  %v2322_v22 = vadd.f32 %v2316_v26, %v2215_v39 }
 0x5be   : > { %v2332_v1 = vadd.f32 %v2681_v58, %v2322_v22  ;;  %3472 = vmatmul.mubr.msk.f32.gmra.mrb[60].mxu0 %vm1052_vm6, %v2334_v45 }
 0x5c0   : > { %v2335_v18 = vmax.f32 %v2332_v1, 0.0 }
 0x5c2   : > { %3475 = vmatmul.mubr.msk.f32.vlgmr.msra.gmra.mrb[68].mxu1 %vm1052_vm6, %v2335_v18 }
 0x68d   : > { %v2426_v13 = vpop.f32.mrb[58].mxu0 }
 0x68e   : > { %v2427_v16 = vadd.f32 %v2682_v41, %v2426_v13  ;;  %v3470_v55 = vpop.f32.mrb[59].mxu0 }
 0x690   : > { %2440 = vst.msk [vmem:[%s472_s16] sm:$0xff] %vm2439_vm10, %v2427_v16 }
 0x691   : > { %v2431_v40 = vpop.f32.mrb[60].mxu0 }
 0x692   : > { %v3473_v46 = vpop.f32.mrb[61].mxu0 }
 0x695   : > { %v2435_v61 = vpop.f32.mrb[68].mxu1 }
 0x696   : > { %v3476_v53 = vpop.f32.mrb[69].mxu1 }
 0x697 PF: > { %s25_s29 = sadd.s32 1, %s3780_s29  }
 0x698   : > { %p22_p4 = scmp.ge.s32.totalorder %s25_s29, 4  }
 0x69a   :  { %24 = sbr.rel (!%p22_p4) target bundleno = 1 (0x1), region = 121 }

</bundles_post_ra>
